<compile_context>
chip_gen: v5e
topology: v5e:2x2
jax: 0.10.0
libtpu: 0.0.40
codegen_flags: <defaults>
</compile_context>

<pallas_src>
import jax
import jax.numpy as jnp
from jax.experimental import pallas as pl
from jax.experimental.pallas import tpu as pltpu


_NEG_BIG = -1e30


def _round_up(x, m):
    return (x + m - 1) // m * m


def _pad2(a, rows, cols):
    return jnp.pad(a, ((0, rows - a.shape[0]), (0, cols - a.shape[1])))


# ----------------------------- Pallas kernels ------------------------------ #
def decoder_step_kernel(
    x_ref,         # (Bp, Hp)      bf16  embedded input (dropout = identity, eval mode)
    h_ref,         # (Bp, Hp)      f32   previous hidden state
    enc_ref,       # (Bp, Lp, Hp)  bf16  encoder outputs, batch-major, padded
    amask_ref,     # (1, 1, Lp)    f32   additive attention mask (0 valid / -1e30 pad)
    wih_t_ref,     # (Hp, 3Hp)     bf16  GRU input weights, transposed, gates [r|z|n]
    whh_t_ref,     # (Hp, 3Hp)     bf16  GRU hidden weights, transposed
    b_rz_ref,      # (1, 2Hp)      f32   b_ih + b_hh pre-added for the r,z gates
    b_in_ref,      # (1, Hp)       f32   b_ih for the n gate
    b_hn_ref,      # (1, Hp)       f32   b_hh for the n gate
    wcat_h_t_ref,  # (Hp, Hp)      bf16  concat Linear, rnn-output half, transposed
    wcat_c_t_ref,  # (Hp, Hp)      bf16  concat Linear, context half, transposed
    bcat_ref,      # (1, Hp)       f32
    wout_t_ref,    # (Hp, TILE_V)  bf16  output Linear tile, transposed (streamed)
    bout_ref,      # (1, TILE_V)   f32   padded vocab columns hold -1e30
    logits_ref,    # (Bp, TILE_V)  f32   out: logits tile (lane-dense)
    lse_ref,       # (Bp, 128)     f32   out: logsumexp over full vocab (lane-broadcast)
    hid_ref,       # (Bp, Hp)      f32   out: new hidden state
    cat_sc,        # (Bp, Hp)      bf16  scratch: concat output, resident across V tiles
    m_sc,          # (Bp, 1)       f32   scratch: running max
    l_sc,          # (Bp, 1)       f32   scratch: running sum of exp
):
    j = pl.program_id(0)
    hp = h_ref.shape[1]

    # ---------- run the "small" part of the step only on the first vocab tile -------
    @pl.when(j == 0)
    def _prologue():
        x = x_ref[...]                                    # (Bp, Hp) bf16
        h = h_ref[...]                                    # (Bp, Hp) f32
        enc = enc_ref[...]                                # (Bp, Lp, Hp) bf16

        # GRU cell (PyTorch gate order r, z, n); fused (Bp, 3Hp) matmuls, f32 gates.
        gi = jnp.dot(x, wih_t_ref[...], preferred_element_type=jnp.float32)
        gh = jnp.dot(h.astype(jnp.bfloat16), whh_t_ref[...],
                     preferred_element_type=jnp.float32)
        rz = jax.nn.sigmoid(gi[:, :2 * hp] + gh[:, :2 * hp] + b_rz_ref[...])
        r, z = rz[:, :hp], rz[:, hp:]
        n = jnp.tanh(gi[:, 2 * hp:] + b_in_ref[...]
                     + r * (gh[:, 2 * hp:] + b_hn_ref[...]))
        h_new = (1.0 - z) * n + z * h                     # (Bp, Hp) f32
        hid_ref[...] = h_new

        # Dot attention on the MXU (flash-style contractions).
        h3 = h_new.astype(jnp.bfloat16)[:, None, :]       # (Bp, 1, Hp)
        s = jnp.einsum('bqh,bkh->bqk', h3, enc,
                       preferred_element_type=jnp.float32)        # (Bp, 1, Lp)
        s = s + amask_ref[...]                            # mask padded L positions
        s = s - jnp.max(s, axis=-1, keepdims=True)
        e = jnp.exp(s)
        attn = e * pl.reciprocal(jnp.sum(e, axis=-1, keepdims=True), approx=True)
        ctx = jnp.einsum('bqk,bkh->bqh', attn.astype(jnp.bfloat16), enc,
                         preferred_element_type=jnp.float32)      # (Bp, 1, Hp)
        ctx = ctx.reshape(ctx.shape[0], hp)               # (Bp, Hp) f32

        # concat -> Linear -> tanh, split into two matmuls (no lane-axis concatenate).
        cat = jnp.tanh(
            jnp.dot(h_new.astype(jnp.bfloat16), wcat_h_t_ref[...],
                    preferred_element_type=jnp.float32)
            + jnp.dot(ctx.astype(jnp.bfloat16), wcat_c_t_ref[...],
                      preferred_element_type=jnp.float32)
            + bcat_ref[...])
        cat_sc[...] = cat.astype(jnp.bfloat16)

        m_sc[...] = jnp.full_like(m_sc, -jnp.inf)
        l_sc[...] = jnp.zeros_like(l_sc)

    # ---------- vocab projection: one streamed tile per grid step + online lse ------
    logits = (jnp.dot(cat_sc[...], wout_t_ref[...],
                      preferred_element_type=jnp.float32) + bout_ref[...])
    logits_ref[...] = logits

    m_prev = m_sc[...]
    m_new = jnp.maximum(m_prev, jnp.max(logits, axis=-1, keepdims=True))
    l_sc[...] = (l_sc[...] * jnp.exp(m_prev - m_new)
                 + jnp.sum(jnp.exp(logits - m_new), axis=-1, keepdims=True))
    m_sc[...] = m_new

    @pl.when(j == pl.num_programs(0) - 1)
    def _epilogue():
        lse = m_sc[...] + jnp.log(l_sc[...])              # (Bp, 1)
        lse_ref[...] = jnp.broadcast_to(lse, lse_ref.shape)


def softmax_finalize_kernel(logits_ref, lse_ref, out_ref):
    # probs = exp(logits - logsumexp); padded vocab columns have logit ~ -1e30 -> 0.
    lse = lse_ref[...][:, 0:1]                            # (Bp, 1)
    out_ref[...] = jnp.exp(logits_ref[...] - lse)


# -------------------------- hoisted, one-time preparation ------------------ #
def prepare_decoder_params(params, *, tile_v=2048):
    """Pad to hardware tiles, transpose, pre-add biases, cast weights to bf16.

    Do this once per model (NOT per decode step)."""
    f32, bf16 = jnp.float32, jnp.bfloat16
    H = params["b_concat"].shape[0]
    V = params["b_out"].shape[0]
    Hp = _round_up(H, 128)
    tile_v = _round_up(min(tile_v, _round_up(V, 128)), 128)
    Vp = _round_up(V, tile_v)

    def gate_blocks_w(w):            # (3H, H) -> (Hp, 3Hp), transposed gate-by-gate
        cols = []
        for g in range(3):
            wg = _pad2(w[g * H:(g + 1) * H, :].astype(f32), Hp, Hp)   # (out Hp, in Hp)
            cols.append(wg.T)                                          # (in Hp, out Hp)
        return jnp.concatenate(cols, axis=1).astype(bf16)

    def gate_blocks_b(b):            # (3H,) -> [r, z, n] each padded to (Hp,)
        return [jnp.pad(b[g * H:(g + 1) * H].astype(f32), (0, Hp - H)) for g in range(3)]

    bih = gate_blocks_b(params["b_ih"])
    bhh = gate_blocks_b(params["b_hh"])

    wc = params["w_concat"].astype(f32)                               # (H, 2H)
    w_out = _pad2(params["w_out"].astype(f32), Vp, Hp)                # (Vp, Hp)

    return dict(
        H=H, V=V, Hp=Hp, Vp=Vp, tile_v=tile_v,
        embedding=jnp.pad(params["embedding"].astype(f32),
                          ((0, 0), (0, Hp - H))).astype(bf16),        # (V, Hp)
        w_ih_t=gate_blocks_w(params["w_ih"]),                         # (Hp, 3Hp)
        w_hh_t=gate_blocks_w(params["w_hh"]),                         # (Hp, 3Hp)
        b_rz=jnp.concatenate([bih[0] + bhh[0], bih[1] + bhh[1]])[None, :],   # (1, 2Hp)
        b_in=bih[2][None, :],                                         # (1, Hp)
        b_hn=bhh[2][None, :],                                         # (1, Hp)
        w_cat_h_t=_pad2(wc[:, :H], Hp, Hp).T.astype(bf16),            # (Hp, Hp)
        w_cat_c_t=_pad2(wc[:, H:], Hp, Hp).T.astype(bf16),            # (Hp, Hp)
        b_cat=jnp.pad(params["b_concat"].astype(f32), (0, Hp - H))[None, :],
        w_out_t=w_out.T.astype(bf16),                                 # (Hp, Vp)
        b_out=jnp.pad(params["b_out"].astype(f32), (0, Vp - V),
                      constant_values=_NEG_BIG)[None, :],             # (1, Vp)
    )


def prepare_encoder_outputs(encoder_outputs, Hp):
    """Once per sequence: (L, B, H) -> padded batch-major (Bp, Lp, Hp) bf16 + mask."""
    L, B, H = encoder_outputs.shape
    Bp, Lp = _round_up(B, 8), _round_up(L, 8)
    enc = jnp.transpose(encoder_outputs.astype(jnp.float32), (1, 0, 2))
    enc = jnp.pad(enc, ((0, Bp - B), (0, Lp - L), (0, Hp - H))).astype(jnp.bfloat16)
    amask = jnp.where(jnp.arange(Lp) < L, 0.0, _NEG_BIG).astype(jnp.float32)
    return enc, amask[None, None, :]


# ------------------------------ per-step wrapper --------------------------- #
def luong_attn_decoder_step(input_step, last_hidden, enc_padded, attn_mask, prep):
    """One decode step. Mirrors LuongAttnDecoderRNN.forward (attn='dot', n_layers=1).

    input_step: (1, B) int32, last_hidden: (1, B, H) f32.
    Returns (softmax probs (B, V), new hidden (1, B, H))."""
    H, V, Hp, Vp, tile_v = (prep[k] for k in ("H", "V", "Hp", "Vp", "tile_v"))
    Bp, Lp, _ = enc_padded.shape
    B = input_step.shape[1]
    n_v = Vp // tile_v

    # Embedding lookup stays in XLA (one small gather per step).
    # TODO(synk): embedding_dropout is training-only; identity here (eval mode).
    # TODO(synk): with PrefetchScalarGridSpec the token ids could drive an in-kernel
    #             embedding-row gather instead of this XLA gather.
    x = jnp.pad(prep["embedding"][input_step[0]], ((0, Bp - B), (0, 0)))   # (Bp,Hp) bf16
    h0 = jnp.pad(last_hidden[0].astype(jnp.float32),
                 ((0, Bp - B), (0, Hp - H)))                               # (Bp,Hp) f32

    res2 = lambda j: (0, 0)
    res3 = lambda j: (0, 0, 0)

    logits, lse, h_new = pl.pallas_call(
        decoder_step_kernel,
        out_shape=(
            jax.ShapeDtypeStruct((Bp, Vp), jnp.float32),
            jax.ShapeDtypeStruct((Bp, 128), jnp.float32),
            jax.ShapeDtypeStruct((Bp, Hp), jnp.float32),
        ),
        grid=(n_v,),
        in_specs=[
            pl.BlockSpec((Bp, Hp), res2),                    # x
            pl.BlockSpec((Bp, Hp), res2),                    # h
            pl.BlockSpec((Bp, Lp, Hp), res3),                # encoder outputs
            pl.BlockSpec((1, 1, Lp), res3),                  # attention mask
            pl.BlockSpec((Hp, 3 * Hp), res2),                # w_ih_t
            pl.BlockSpec((Hp, 3 * Hp), res2),                # w_hh_t
            pl.BlockSpec((1, 2 * Hp), res2),                 # b_rz
            pl.BlockSpec((1, Hp), res2),                     # b_in
            pl.BlockSpec((1, Hp), res2),                     # b_hn
            pl.BlockSpec((Hp, Hp), res2),                    # w_cat_h_t
            pl.BlockSpec((Hp, Hp), res2),                    # w_cat_c_t
            pl.BlockSpec((1, Hp), res2),                     # b_cat
            pl.BlockSpec((Hp, tile_v), lambda j: (0, j)),    # w_out_t (streamed tiles)
            pl.BlockSpec((1, tile_v), lambda j: (0, j)),     # b_out   (streamed tiles)
        ],
        out_specs=(
            pl.BlockSpec((Bp, tile_v), lambda j: (0, j)),    # logits (lane-dense)
            pl.BlockSpec((Bp, 128), res2),                   # logsumexp
            pl.BlockSpec((Bp, Hp), res2),                    # new hidden
        ),
        scratch_shapes=[
            pltpu.VMEM((Bp, Hp), jnp.bfloat16),              # concat output
            pltpu.VMEM((Bp, 1), jnp.float32),                # running max
            pltpu.VMEM((Bp, 1), jnp.float32),                # running sum-exp
        ],
        input_output_aliases={1: 2},                         # reuse hidden-state buffer
        compiler_params=pltpu.CompilerParams(
            dimension_semantics=("arbitrary",)),             # online lse carries over V
    )(x, h0, enc_padded, attn_mask,
      prep["w_ih_t"], prep["w_hh_t"], prep["b_rz"], prep["b_in"], prep["b_hn"],
      prep["w_cat_h_t"], prep["w_cat_c_t"], prep["b_cat"],
      prep["w_out_t"], prep["b_out"])

    probs = pl.pallas_call(
        softmax_finalize_kernel,
        out_shape=jax.ShapeDtypeStruct((Bp, Vp), jnp.float32),
        grid=(n_v,),
        in_specs=[
            pl.BlockSpec((Bp, tile_v), lambda j: (0, j)),
            pl.BlockSpec((Bp, 128), lambda j: (0, 0)),
        ],
        out_specs=pl.BlockSpec((Bp, tile_v), lambda j: (0, j)),
        input_output_aliases={0: 0},                         # normalize logits in place
        compiler_params=pltpu.CompilerParams(
            dimension_semantics=("parallel",)),
    )(logits, lse)

    return probs[:B, :V], h_new[:B, :H][None, :, :]


def luong_attn_decoder_forward(input_step, last_hidden, encoder_outputs, params,
                               *, tile_v=2048):
    """One-shot convenience API matching the PyTorch module signature. For decode
    loops, call prepare_* once and luong_attn_decoder_step per step instead."""
    prep = prepare_decoder_params(params, tile_v=tile_v)
    enc_padded, attn_mask = prepare_encoder_outputs(encoder_outputs, prep["Hp"])
    return luong_attn_decoder_step(input_step, last_hidden, enc_padded, attn_mask, prep)


# ------------------------------ pure-JAX reference -------------------------- #
def reference_forward(input_step, last_hidden, encoder_outputs, params):
    H = params["b_concat"].shape[0]
    emb = params["embedding"][input_step[0]]                  # (B, H)
    h = last_hidden[0]                                        # (B, H)
    gi = emb @ params["w_ih"].T + params["b_ih"]
    gh = h @ params["w_hh"].T + params["b_hh"]
    r = jax.nn.sigmoid(gi[:, :H] + gh[:, :H])
    z = jax.nn.sigmoid(gi[:, H:2 * H] + gh[:, H:2 * H])
    n = jnp.tanh(gi[:, 2 * H:] + r * gh[:, 2 * H:])
    h_new = (1.0 - z) * n + z * h
    enc = jnp.transpose(encoder_outputs, (1, 0, 2))           # (B, L, H)
    score = jnp.einsum('bh,blh->bl', h_new, enc)
    attn = jax.nn.softmax(score, axis=1)
    ctx = jnp.einsum('bl,blh->bh', attn, enc)
    cat = jnp.concatenate([h_new, ctx], axis=1)
    co = jnp.tanh(cat @ params["w_concat"].T + params["b_concat"])
    logits = co @ params["w_out"].T + params["b_out"]
    return jax.nn.softmax(logits, axis=1), h_new[None, :, :]


# ------------------------------ param init (deterministic) ------------------ #
def init_params(key, hidden_size, output_size):
    H, V = hidden_size, output_size
    ks = jax.random.split(key, 10)
    k = 1.0 / jnp.sqrt(H)

    def u(kk, shape):
        return jax.random.uniform(kk, shape, jnp.float32, -k, k)

    return {
        "embedding": jax.random.normal(ks[0], (V, H), jnp.float32) * 0.1,
        "w_ih": u(ks[1], (3 * H, H)),
        "w_hh": u(ks[2], (3 * H, H)),
        "b_ih": u(ks[3], (3 * H,)),
        "b_hh": u(ks[4], (3 * H,)),
        "w_concat": u(ks[5], (H, 2 * H)),
        "b_concat": u(ks[6], (H,)),
        "w_out": u(ks[7], (V, H)),
        "b_out": u(ks[8], (V,)),
    }


if __name__ == "__main__":
    # Small shapes that still exercise batch / seq / hidden / vocab padding and the
    # multi-tile vocab grid (tile_v=128 -> 3 vocab tiles).
    B, H, L, V = 4, 32, 10, 300

    key = jax.random.PRNGKey(0)
    kp, k1, k2, k3 = jax.random.split(key, 4)
    params = init_params(kp, H, V)

    input_step = jax.random.randint(k1, (1, B), 0, V, dtype=jnp.int32)   # (1, B)
    last_hidden = jax.random.normal(k2, (1, B, H), jnp.float32)          # (1, B, H)
    encoder_outputs = jax.random.normal(k3, (L, B, H), jnp.float32)      # (L, B, H)

    # Hoisted one-time prep (per model / per sequence), not per decode step.
    prep = prepare_decoder_params(params, tile_v=128)
    enc_padded, attn_mask = prepare_encoder_outputs(encoder_outputs, prep["Hp"])

    output, hidden = luong_attn_decoder_step(
        input_step, last_hidden, enc_padded, attn_mask, prep)
    output = jax.block_until_ready(output)
    hidden = jax.block_until_ready(hidden)

    assert output.shape == (B, V)
    assert hidden.shape == (1, B, H)
    assert bool(jnp.all(jnp.isfinite(output)))
    assert jnp.allclose(jnp.sum(output, axis=1), 1.0, atol=1e-4)

    # Compare against a pure-JAX f32 reference (bf16 weights -> loose tolerance).
    ref_out, ref_hid = reference_forward(input_step, last_hidden, encoder_outputs, params)
    assert float(jnp.max(jnp.abs(output - ref_out))) < 5e-3
    assert float(jnp.max(jnp.abs(hidden - ref_hid))) < 5e-2

    print("KERNEL_OK")
</pallas_src>

<mosaic_0001>
module attributes {stable_mosaic.version = 11 : i64} {
  func.func @decoder_step_kernel(%arg0: i32, %arg1: memref<8x128xbf16, #tpu.memory_space<vmem>>, %arg2: memref<8x128xf32, #tpu.memory_space<vmem>>, %arg3: memref<8x16x128xbf16, #tpu.memory_space<vmem>>, %arg4: memref<1x1x16xf32, #tpu.memory_space<vmem>>, %arg5: memref<128x384xbf16, #tpu.memory_space<vmem>>, %arg6: memref<128x384xbf16, #tpu.memory_space<vmem>>, %arg7: memref<1x256xf32, #tpu.memory_space<vmem>>, %arg8: memref<1x128xf32, #tpu.memory_space<vmem>>, %arg9: memref<1x128xf32, #tpu.memory_space<vmem>>, %arg10: memref<128x128xbf16, #tpu.memory_space<vmem>>, %arg11: memref<128x128xbf16, #tpu.memory_space<vmem>>, %arg12: memref<1x128xf32, #tpu.memory_space<vmem>>, %arg13: memref<128x128xbf16, #tpu.memory_space<vmem>>, %arg14: memref<1x128xf32, #tpu.memory_space<vmem>>, %arg15: memref<8x128xf32, #tpu.memory_space<vmem>>, %arg16: memref<8x128xf32, #tpu.memory_space<vmem>>, %arg17: memref<8x128xf32, #tpu.memory_space<vmem>>, %arg18: memref<8x128xbf16, #tpu.memory_space<vmem>>, %arg19: memref<8x1xf32, #tpu.memory_space<vmem>>, %arg20: memref<8x1xf32, #tpu.memory_space<vmem>>) attributes {dimension_semantics = [#tpu.dimension_semantics<arbitrary>], iteration_bounds = array<i64: 3>, scalar_prefetch = 0 : i64, scratch_operands = 3 : i64, tpu.core_type = #tpu.core_type<tc>, window_params = [{pipeline_mode = #tpu.pipeline_mode<synchronous>, transform_indices = @transform_0, window_bounds = array<i64: 8, 128>}, {pipeline_mode = #tpu.pipeline_mode<synchronous>, transform_indices = @transform_1, window_bounds = array<i64: 8, 128>}, {pipeline_mode = #tpu.pipeline_mode<synchronous>, transform_indices = @transform_2, window_bounds = array<i64: 8, 16, 128>}, {pipeline_mode = #tpu.pipeline_mode<synchronous>, transform_indices = @transform_3, window_bounds = array<i64: 1, 1, 16>}, {pipeline_mode = #tpu.pipeline_mode<synchronous>, transform_indices = @transform_4, window_bounds = array<i64: 128, 384>}, {pipeline_mode = #tpu.pipeline_mode<synchronous>, transform_indices = @transform_5, window_bounds = array<i64: 128, 384>}, {pipeline_mode = #tpu.pipeline_mode<synchronous>, transform_indices = @transform_6, window_bounds = array<i64: 1, 256>}, {pipeline_mode = #tpu.pipeline_mode<synchronous>, transform_indices = @transform_7, window_bounds = array<i64: 1, 128>}, {pipeline_mode = #tpu.pipeline_mode<synchronous>, transform_indices = @transform_8, window_bounds = array<i64: 1, 128>}, {pipeline_mode = #tpu.pipeline_mode<synchronous>, transform_indices = @transform_9, window_bounds = array<i64: 128, 128>}, {pipeline_mode = #tpu.pipeline_mode<synchronous>, transform_indices = @transform_10, window_bounds = array<i64: 128, 128>}, {pipeline_mode = #tpu.pipeline_mode<synchronous>, transform_indices = @transform_11, window_bounds = array<i64: 1, 128>}, {transform_indices = @transform_12, window_bounds = array<i64: 128, 128>}, {transform_indices = @transform_13, window_bounds = array<i64: 1, 128>}, {transform_indices = @transform_14, window_bounds = array<i64: 8, 128>}, {pipeline_mode = #tpu.pipeline_mode<synchronous>, transform_indices = @transform_15, window_bounds = array<i64: 8, 128>}, {pipeline_mode = #tpu.pipeline_mode<synchronous>, transform_indices = @transform_16, window_bounds = array<i64: 8, 128>}]} {
    %c0_i32 = arith.constant 0 : i32
    %0 = arith.cmpi eq, %arg0, %c0_i32 : i32
    %1 = arith.extui %0 : i1 to i32
    %c0_i32_0 = arith.constant 0 : i32
    %2 = arith.cmpi ne, %1, %c0_i32_0 : i32
    scf.if %2 {
      %c0_19 = arith.constant 0 : index
      %c0_20 = arith.constant 0 : index
      %29 = vector.load %arg1[%c0_19, %c0_20] : memref<8x128xbf16, #tpu.memory_space<vmem>>, vector<8x128xbf16>
      %c0_21 = arith.constant 0 : index
      %c0_22 = arith.constant 0 : index
      %30 = vector.load %arg2[%c0_21, %c0_22] : memref<8x128xf32, #tpu.memory_space<vmem>>, vector<8x128xf32>
      %c0_23 = arith.constant 0 : index
      %c0_24 = arith.constant 0 : index
      %c0_25 = arith.constant 0 : index
      %31 = vector.load %arg3[%c0_23, %c0_24, %c0_25] : memref<8x16x128xbf16, #tpu.memory_space<vmem>>, vector<8x16x128xbf16>
      %c0_26 = arith.constant 0 : index
      %c0_27 = arith.constant 0 : index
      %32 = vector.load %arg5[%c0_26, %c0_27] : memref<128x384xbf16, #tpu.memory_space<vmem>>, vector<128x384xbf16>
      %cst_28 = arith.constant dense<0.000000e+00> : vector<8x384xf32>
      %33 = tpu.matmul %29, %32, %cst_28 {dimension_numbers = #tpu.dot_dimension_numbers<[1], [0], [0], [1], [0, 0, 1, 1], [], []>} : vector<8x128xbf16>, vector<128x384xbf16>, vector<8x384xf32> -> vector<8x384xf32>
      %34 = arith.truncf %30 : vector<8x128xf32> to vector<8x128xbf16>
      %c0_29 = arith.constant 0 : index
      %c0_30 = arith.constant 0 : index
      %35 = vector.load %arg6[%c0_29, %c0_30] : memref<128x384xbf16, #tpu.memory_space<vmem>>, vector<128x384xbf16>
      %cst_31 = arith.constant dense<0.000000e+00> : vector<8x384xf32>
      %36 = tpu.matmul %34, %35, %cst_31 {dimension_numbers = #tpu.dot_dimension_numbers<[1], [0], [0], [1], [0, 0, 1, 1], [], []>} : vector<8x128xbf16>, vector<128x384xbf16>, vector<8x384xf32> -> vector<8x384xf32>
      %37 = vector.extract_strided_slice %33 {offsets = [0, 0], sizes = [8, 256], strides = [1, 1]} : vector<8x384xf32> to vector<8x256xf32>
      %38 = vector.extract_strided_slice %36 {offsets = [0, 0], sizes = [8, 256], strides = [1, 1]} : vector<8x384xf32> to vector<8x256xf32>
      %39 = arith.addf %37, %38 : vector<8x256xf32>
      %c0_32 = arith.constant 0 : index
      %c0_33 = arith.constant 0 : index
      %40 = vector.load %arg7[%c0_32, %c0_33] : memref<1x256xf32, #tpu.memory_space<vmem>>, vector<1x256xf32>
      %41 = vector.broadcast %40 : vector<1x256xf32> to vector<8x256xf32>
      %42 = arith.addf %39, %41 : vector<8x256xf32>
      %43 = arith.negf %42 : vector<8x256xf32>
      %44 = math.exp %43 : vector<8x256xf32>
      %cst_34 = arith.constant 1.000000e+00 : f32
      %45 = vector.broadcast %cst_34 : f32 to vector<8x256xf32>
      %46 = arith.addf %45, %44 : vector<8x256xf32>
      %47 = arith.divf %45, %46 : vector<8x256xf32>
      %48 = vector.extract_strided_slice %47 {offsets = [0, 0], sizes = [8, 128], strides = [1, 1]} : vector<8x256xf32> to vector<8x128xf32>
      %49 = vector.extract_strided_slice %47 {offsets = [0, 128], sizes = [8, 128], strides = [1, 1]} : vector<8x256xf32> to vector<8x128xf32>
      %50 = vector.extract_strided_slice %33 {offsets = [0, 256], sizes = [8, 128], strides = [1, 1]} : vector<8x384xf32> to vector<8x128xf32>
      %c0_35 = arith.constant 0 : index
      %c0_36 = arith.constant 0 : index
      %51 = vector.load %arg8[%c0_35, %c0_36] : memref<1x128xf32, #tpu.memory_space<vmem>>, vector<1x128xf32>
      %52 = vector.broadcast %51 : vector<1x128xf32> to vector<8x128xf32>
      %53 = arith.addf %50, %52 : vector<8x128xf32>
      %54 = vector.extract_strided_slice %36 {offsets = [0, 256], sizes = [8, 128], strides = [1, 1]} : vector<8x384xf32> to vector<8x128xf32>
      %c0_37 = arith.constant 0 : index
      %c0_38 = arith.constant 0 : index
      %55 = vector.load %arg9[%c0_37, %c0_38] : memref<1x128xf32, #tpu.memory_space<vmem>>, vector<1x128xf32>
      %56 = vector.broadcast %55 : vector<1x128xf32> to vector<8x128xf32>
      %57 = arith.addf %54, %56 : vector<8x128xf32>
      %58 = arith.mulf %48, %57 : vector<8x128xf32>
      %59 = arith.addf %53, %58 : vector<8x128xf32>
      %60 = math.tanh %59 : vector<8x128xf32>
      %cst_39 = arith.constant 1.000000e+00 : f32
      %61 = vector.broadcast %cst_39 : f32 to vector<8x128xf32>
      %62 = arith.subf %61, %49 : vector<8x128xf32>
      %63 = arith.mulf %62, %60 : vector<8x128xf32>
      %64 = arith.mulf %49, %30 : vector<8x128xf32>
      %65 = arith.addf %63, %64 : vector<8x128xf32>
      %c0_40 = arith.constant 0 : index
      %c0_41 = arith.constant 0 : index
      %66 = vector.load %arg17[%c0_40, %c0_41] : memref<8x128xf32, #tpu.memory_space<vmem>>, vector<8x128xf32>
      tpu.vector_store %arg17[%c0_40, %c0_41], %65 {strides = array<i32>} : memref<8x128xf32, #tpu.memory_space<vmem>>, vector<8x128xf32>,
      %67 = arith.truncf %65 : vector<8x128xf32> to vector<8x128xbf16>
      %68 = vector.shape_cast %67 : vector<8x128xbf16> to vector<8x1x128xbf16>
      "tpu.trace_start"() <{level = 10 : i32, message = "bqh,bkh->bqk"}> : () -> ()
      %cst_42 = arith.constant dense<0.000000e+00> : vector<8x1x16xf32>
      %69 = tpu.matmul %68, %31, %cst_42 {dimension_numbers = #tpu.dot_dimension_numbers<[2], [2], [1], [1], [0, 0, 0, 1, 1, 1], [0], [0]>} : vector<8x1x128xbf16>, vector<8x16x128xbf16>, vector<8x1x16xf32> -> vector<8x1x16xf32>
      "tpu.trace_stop"() : () -> ()
      %c0_43 = arith.constant 0 : index
      %c0_44 = arith.constant 0 : index
      %c0_45 = arith.constant 0 : index
      %70 = vector.load %arg4[%c0_43, %c0_44, %c0_45] : memref<1x1x16xf32, #tpu.memory_space<vmem>>, vector<1x1x16xf32>
      %71 = vector.broadcast %70 : vector<1x1x16xf32> to vector<8x1x16xf32>
      %72 = arith.addf %69, %71 : vector<8x1x16xf32>
      %cst_46 = arith.constant dense<0xFF800000> : vector<8x1xf32>
      %73 = vector.multi_reduction <maximumf>, %72, %cst_46 [2] : vector<8x1x16xf32> to vector<8x1xf32>
      %74 = vector.shape_cast %73 : vector<8x1xf32> to vector<8x1x1xf32>
      %75 = vector.broadcast %74 : vector<8x1x1xf32> to vector<8x1x16xf32>
      %76 = arith.subf %72, %75 : vector<8x1x16xf32>
      %77 = math.exp %76 : vector<8x1x16xf32>
      %cst_47 = arith.constant dense<0.000000e+00> : vector<8x1xf32>
      %78 = vector.multi_reduction <add>, %77, %cst_47 [2] : vector<8x1x16xf32> to vector<8x1xf32>
      %79 = vector.shape_cast %78 : vector<8x1xf32> to vector<8x1x1xf32>
      %80 = tpu.reciprocal %79 {approx = true} : vector<8x1x1xf32> -> vector<8x1x1xf32>
      %81 = vector.broadcast %80 : vector<8x1x1xf32> to vector<8x1x16xf32>
      %82 = arith.mulf %77, %81 : vector<8x1x16xf32>
      %83 = arith.truncf %82 : vector<8x1x16xf32> to vector<8x1x16xbf16>
      "tpu.trace_start"() <{level = 10 : i32, message = "bqk,bkh->bqh"}> : () -> ()
      %cst_48 = arith.constant dense<0.000000e+00> : vector<8x1x128xf32>
      %84 = tpu.matmul %83, %31, %cst_48 {dimension_numbers = #tpu.dot_dimension_numbers<[2], [1], [1], [2], [0, 0, 0, 1, 1, 2], [0], [0]>} : vector<8x1x16xbf16>, vector<8x16x128xbf16>, vector<8x1x128xf32> -> vector<8x1x128xf32>
      "tpu.trace_stop"() : () -> ()
      %85 = vector.shape_cast %84 : vector<8x1x128xf32> to vector<8x128xf32>
      %86 = arith.truncf %65 : vector<8x128xf32> to vector<8x128xbf16>
      %c0_49 = arith.constant 0 : index
      %c0_50 = arith.constant 0 : index
      %87 = vector.load %arg10[%c0_49, %c0_50] : memref<128x128xbf16, #tpu.memory_space<vmem>>, vector<128x128xbf16>
      %cst_51 = arith.constant dense<0.000000e+00> : vector<8x128xf32>
      %88 = tpu.matmul %86, %87, %cst_51 {dimension_numbers = #tpu.dot_dimension_numbers<[1], [0], [0], [1], [0, 0, 1, 1], [], []>} : vector<8x128xbf16>, vector<128x128xbf16>, vector<8x128xf32> -> vector<8x128xf32>
      %89 = arith.truncf %85 : vector<8x128xf32> to vector<8x128xbf16>
      %c0_52 = arith.constant 0 : index
      %c0_53 = arith.constant 0 : index
      %90 = vector.load %arg11[%c0_52, %c0_53] : memref<128x128xbf16, #tpu.memory_space<vmem>>, vector<128x128xbf16>
      %cst_54 = arith.constant dense<0.000000e+00> : vector<8x128xf32>
      %91 = tpu.matmul %89, %90, %cst_54 {dimension_numbers = #tpu.dot_dimension_numbers<[1], [0], [0], [1], [0, 0, 1, 1], [], []>} : vector<8x128xbf16>, vector<128x128xbf16>, vector<8x128xf32> -> vector<8x128xf32>
      %92 = arith.addf %88, %91 : vector<8x128xf32>
      %c0_55 = arith.constant 0 : index
      %c0_56 = arith.constant 0 : index
      %93 = vector.load %arg12[%c0_55, %c0_56] : memref<1x128xf32, #tpu.memory_space<vmem>>, vector<1x128xf32>
      %94 = vector.broadcast %93 : vector<1x128xf32> to vector<8x128xf32>
      %95 = arith.addf %92, %94 : vector<8x128xf32>
      %96 = math.tanh %95 : vector<8x128xf32>
      %97 = arith.truncf %96 : vector<8x128xf32> to vector<8x128xbf16>
      %c0_57 = arith.constant 0 : index
      %c0_58 = arith.constant 0 : index
      %98 = vector.load %arg18[%c0_57, %c0_58] : memref<8x128xbf16, #tpu.memory_space<vmem>>, vector<8x128xbf16>
      tpu.vector_store %arg18[%c0_57, %c0_58], %97 {strides = array<i32>} : memref<8x128xbf16, #tpu.memory_space<vmem>>, vector<8x128xbf16>,
      %cst_59 = arith.constant 0xFF800000 : f32
      %99 = vector.broadcast %cst_59 : f32 to vector<8x1xf32>
      %c0_60 = arith.constant 0 : index
      %c0_61 = arith.constant 0 : index
      %100 = vector.load %arg19[%c0_60, %c0_61] : memref<8x1xf32, #tpu.memory_space<vmem>>, vector<8x1xf32>
      tpu.vector_store %arg19[%c0_60, %c0_61], %99 {strides = array<i32>} : memref<8x1xf32, #tpu.memory_space<vmem>>, vector<8x1xf32>,
      %cst_62 = arith.constant 0.000000e+00 : f32
      %101 = vector.broadcast %cst_62 : f32 to vector<8x1xf32>
      %c0_63 = arith.constant 0 : index
      %c0_64 = arith.constant 0 : index
      %102 = vector.load %arg20[%c0_63, %c0_64] : memref<8x1xf32, #tpu.memory_space<vmem>>, vector<8x1xf32>
      tpu.vector_store %arg20[%c0_63, %c0_64], %101 {strides = array<i32>} : memref<8x1xf32, #tpu.memory_space<vmem>>, vector<8x1xf32>,
    } else {
    }
    %c0 = arith.constant 0 : index
    %c0_1 = arith.constant 0 : index
    %3 = vector.load %arg18[%c0, %c0_1] : memref<8x128xbf16, #tpu.memory_space<vmem>>, vector<8x128xbf16>
    %c0_2 = arith.constant 0 : index
    %c0_3 = arith.constant 0 : index
    %4 = vector.load %arg13[%c0_2, %c0_3] : memref<128x128xbf16, #tpu.memory_space<vmem>>, vector<128x128xbf16>
    %cst = arith.constant dense<0.000000e+00> : vector<8x128xf32>
    %5 = tpu.matmul %3, %4, %cst {dimension_numbers = #tpu.dot_dimension_numbers<[1], [0], [0], [1], [0, 0, 1, 1], [], []>} : vector<8x128xbf16>, vector<128x128xbf16>, vector<8x128xf32> -> vector<8x128xf32>
    %c0_4 = arith.constant 0 : index
    %c0_5 = arith.constant 0 : index
    %6 = vector.load %arg14[%c0_4, %c0_5] : memref<1x128xf32, #tpu.memory_space<vmem>>, vector<1x128xf32>
    %7 = vector.broadcast %6 : vector<1x128xf32> to vector<8x128xf32>
    %8 = arith.addf %5, %7 : vector<8x128xf32>
    %c0_6 = arith.constant 0 : index
    %c0_7 = arith.constant 0 : index
    %9 = vector.load %arg15[%c0_6, %c0_7] : memref<8x128xf32, #tpu.memory_space<vmem>>, vector<8x128xf32>
    tpu.vector_store %arg15[%c0_6, %c0_7], %8 {strides = array<i32>} : memref<8x128xf32, #tpu.memory_space<vmem>>, vector<8x128xf32>,
    %c0_8 = arith.constant 0 : index
    %c0_9 = arith.constant 0 : index
    %10 = vector.load %arg19[%c0_8, %c0_9] : memref<8x1xf32, #tpu.memory_space<vmem>>, vector<8x1xf32>
    %cst_10 = arith.constant dense<0xFF800000> : vector<8xf32>
    %11 = vector.multi_reduction <maximumf>, %8, %cst_10 [1] : vector<8x128xf32> to vector<8xf32>
    %12 = vector.shape_cast %11 : vector<8xf32> to vector<8x1xf32>
    %13 = arith.maximumf %10, %12 : vector<8x1xf32>
    %c0_11 = arith.constant 0 : index
    %c0_12 = arith.constant 0 : index
    %14 = vector.load %arg20[%c0_11, %c0_12] : memref<8x1xf32, #tpu.memory_space<vmem>>, vector<8x1xf32>
    %15 = arith.subf %10, %13 : vector<8x1xf32>
    %16 = math.exp %15 : vector<8x1xf32>
    %17 = arith.mulf %14, %16 : vector<8x1xf32>
    %18 = vector.broadcast %13 : vector<8x1xf32> to vector<8x128xf32>
    %19 = arith.subf %8, %18 : vector<8x128xf32>
    %20 = math.exp %19 : vector<8x128xf32>
    %cst_13 = arith.constant dense<0.000000e+00> : vector<8xf32>
    %21 = vector.multi_reduction <add>, %20, %cst_13 [1] : vector<8x128xf32> to vector<8xf32>
    %22 = vector.shape_cast %21 : vector<8xf32> to vector<8x1xf32>
    %23 = arith.addf %17, %22 : vector<8x1xf32>
    %c0_14 = arith.constant 0 : index
    %c0_15 = arith.constant 0 : index
    %24 = vector.load %arg20[%c0_14, %c0_15] : memref<8x1xf32, #tpu.memory_space<vmem>>, vector<8x1xf32>
    tpu.vector_store %arg20[%c0_14, %c0_15], %23 {strides = array<i32>} : memref<8x1xf32, #tpu.memory_space<vmem>>, vector<8x1xf32>,
    %c0_16 = arith.constant 0 : index
    %c0_17 = arith.constant 0 : index
    %25 = vector.load %arg19[%c0_16, %c0_17] : memref<8x1xf32, #tpu.memory_space<vmem>>, vector<8x1xf32>
    tpu.vector_store %arg19[%c0_16, %c0_17], %13 {strides = array<i32>} : memref<8x1xf32, #tpu.memory_space<vmem>>, vector<8x1xf32>,
    %c2_i32 = arith.constant 2 : i32
    %26 = arith.cmpi eq, %arg0, %c2_i32 : i32
    %27 = arith.extui %26 : i1 to i32
    %c0_i32_18 = arith.constant 0 : i32
    %28 = arith.cmpi ne, %27, %c0_i32_18 : i32
    scf.if %28 {
      %c0_19 = arith.constant 0 : index
      %c0_20 = arith.constant 0 : index
      %29 = vector.load %arg19[%c0_19, %c0_20] : memref<8x1xf32, #tpu.memory_space<vmem>>, vector<8x1xf32>
      %c0_21 = arith.constant 0 : index
      %c0_22 = arith.constant 0 : index
      %30 = vector.load %arg20[%c0_21, %c0_22] : memref<8x1xf32, #tpu.memory_space<vmem>>, vector<8x1xf32>
      %31 = math.log %30 : vector<8x1xf32>
      %32 = arith.addf %29, %31 : vector<8x1xf32>
      %33 = vector.shape_cast %32 : vector<8x1xf32> to vector<8x1xf32>
      %34 = vector.broadcast %33 : vector<8x1xf32> to vector<8x128xf32>
      %c0_23 = arith.constant 0 : index
      %c0_24 = arith.constant 0 : index
      %35 = vector.load %arg16[%c0_23, %c0_24] : memref<8x128xf32, #tpu.memory_space<vmem>>, vector<8x128xf32>
      tpu.vector_store %arg16[%c0_23, %c0_24], %34 {strides = array<i32>} : memref<8x128xf32, #tpu.memory_space<vmem>>, vector<8x128xf32>,
    } else {
    }
    return
  }
  func.func @transform_0(%arg0: i32) -> (i32, i32) {
    %c0_i32 = arith.constant 0 : i32
    %c0_i32_0 = arith.constant 0 : i32
    %c0_i32_1 = arith.constant 0 : i32
    return %c0_i32, %c0_i32_0 : i32, i32
  }
  func.func @transform_1(%arg0: i32) -> (i32, i32) {
    %c0_i32 = arith.constant 0 : i32
    %c0_i32_0 = arith.constant 0 : i32
    %c0_i32_1 = arith.constant 0 : i32
    return %c0_i32, %c0_i32_0 : i32, i32
  }
  func.func @transform_2(%arg0: i32) -> (i32, i32, i32) {
    %c0_i32 = arith.constant 0 : i32
    %c0_i32_0 = arith.constant 0 : i32
    %c0_i32_1 = arith.constant 0 : i32
    %c0_i32_2 = arith.constant 0 : i32
    return %c0_i32, %c0_i32_0, %c0_i32_1 : i32, i32, i32
  }
  func.func @transform_3(%arg0: i32) -> (i32, i32, i32) {
    %c0_i32 = arith.constant 0 : i32
    %c0_i32_0 = arith.constant 0 : i32
    %c0_i32_1 = arith.constant 0 : i32
    %c0_i32_2 = arith.constant 0 : i32
    return %c0_i32, %c0_i32_0, %c0_i32_1 : i32, i32, i32
  }
  func.func @transform_4(%arg0: i32) -> (i32, i32) {
    %c0_i32 = arith.constant 0 : i32
    %c0_i32_0 = arith.constant 0 : i32
    %c0_i32_1 = arith.constant 0 : i32
    return %c0_i32, %c0_i32_0 : i32, i32
  }
  func.func @transform_5(%arg0: i32) -> (i32, i32) {
    %c0_i32 = arith.constant 0 : i32
    %c0_i32_0 = arith.constant 0 : i32
    %c0_i32_1 = arith.constant 0 : i32
    return %c0_i32, %c0_i32_0 : i32, i32
  }
  func.func @transform_6(%arg0: i32) -> (i32, i32) {
    %c0_i32 = arith.constant 0 : i32
    %c0_i32_0 = arith.constant 0 : i32
    %c0_i32_1 = arith.constant 0 : i32
    return %c0_i32, %c0_i32_0 : i32, i32
  }
  func.func @transform_7(%arg0: i32) -> (i32, i32) {
    %c0_i32 = arith.constant 0 : i32
    %c0_i32_0 = arith.constant 0 : i32
    %c0_i32_1 = arith.constant 0 : i32
    return %c0_i32, %c0_i32_0 : i32, i32
  }
  func.func @transform_8(%arg0: i32) -> (i32, i32) {
    %c0_i32 = arith.constant 0 : i32
    %c0_i32_0 = arith.constant 0 : i32
    %c0_i32_1 = arith.constant 0 : i32
    return %c0_i32, %c0_i32_0 : i32, i32
  }
  func.func @transform_9(%arg0: i32) -> (i32, i32) {
    %c0_i32 = arith.constant 0 : i32
    %c0_i32_0 = arith.constant 0 : i32
    %c0_i32_1 = arith.constant 0 : i32
    return %c0_i32, %c0_i32_0 : i32, i32
  }
  func.func @transform_10(%arg0: i32) -> (i32, i32) {
    %c0_i32 = arith.constant 0 : i32
    %c0_i32_0 = arith.constant 0 : i32
    %c0_i32_1 = arith.constant 0 : i32
    return %c0_i32, %c0_i32_0 : i32, i32
  }
  func.func @transform_11(%arg0: i32) -> (i32, i32) {
    %c0_i32 = arith.constant 0 : i32
    %c0_i32_0 = arith.constant 0 : i32
    %c0_i32_1 = arith.constant 0 : i32
    return %c0_i32, %c0_i32_0 : i32, i32
  }
  func.func @transform_12(%arg0: i32) -> (i32, i32) {
    %c0_i32 = arith.constant 0 : i32
    %c0_i32_0 = arith.constant 0 : i32
    return %c0_i32, %arg0 : i32, i32
  }
  func.func @transform_13(%arg0: i32) -> (i32, i32) {
    %c0_i32 = arith.constant 0 : i32
    %c0_i32_0 = arith.constant 0 : i32
    return %c0_i32, %arg0 : i32, i32
  }
  func.func @transform_14(%arg0: i32) -> (i32, i32) {
    %c0_i32 = arith.constant 0 : i32
    %c0_i32_0 = arith.constant 0 : i32
    return %c0_i32, %arg0 : i32, i32
  }
  func.func @transform_15(%arg0: i32) -> (i32, i32) {
    %c0_i32 = arith.constant 0 : i32
    %c0_i32_0 = arith.constant 0 : i32
    %c0_i32_1 = arith.constant 0 : i32
    return %c0_i32, %c0_i32_0 : i32, i32
  }
  func.func @transform_16(%arg0: i32) -> (i32, i32) {
    %c0_i32 = arith.constant 0 : i32
    %c0_i32_0 = arith.constant 0 : i32
    %c0_i32_1 = arith.constant 0 : i32
    return %c0_i32, %c0_i32_0 : i32, i32
  }
}

</mosaic_0001>

<bundles_post_ra>
// kernel: tpu_custom_call.1
= control target key start
LH: loop header
LB: loop body
LE: loop exit
PB: predicated region body
PF: predicated region fallthrough
CT: control target
= control target key end

     0   :  { %s3517_s0 = inlined_call_operand.vmem [shape: bf16[8,128], index: 0, kind: input, shape index: {}]   ;;  %s3518_s1 = inlined_call_operand.hbm [shape: f32[8,128], index: 1, kind: input, shape index: {}, may-alias: {1,16}]   ;;  %s3519_s2 = inlined_call_operand.hbm [shape: bf16[8,16,128], index: 2, kind: input, shape index: {}]   ;;  %s3520_s3 = inlined_call_operand.vmem [shape: f32[1,1,16], index: 3, kind: input, shape index: {}]   ;;  %s3521_s4 = inlined_call_operand.hbm [shape: bf16[128,384], index: 4, kind: input, shape index: {}]   ;;  %s3522_s5 = inlined_call_operand.hbm [shape: bf16[128,384], index: 5, kind: input, shape index: {}]   ;;  %s3523_s6 = inlined_call_operand.vmem [shape: f32[1,256], index: 6, kind: input, shape index: {}]   ;;  %s3524_s7 = inlined_call_operand.vmem [shape: f32[1,128], index: 7, kind: input, shape index: {}]   ;;  %s3525_s8 = inlined_call_operand.vmem [shape: f32[1,128], index: 8, kind: input, shape index: {}]   ;;  %s3526_s9 = inlined_call_operand.hbm [shape: bf16[128,128], index: 9, kind: input, shape index: {}]   ;;  %s3527_s10 = inlined_call_operand.hbm [shape: bf16[128,128], index: 10, kind: input, shape index: {}]   ;;  %s3528_s11 = inlined_call_operand.vmem [shape: f32[1,128], index: 11, kind: input, shape index: {}]   ;;  %s3529_s12 = inlined_call_operand.hbm [shape: bf16[128,384], index: 12, kind: input, shape index: {}]   ;;  %s3530_s13 = inlined_call_operand.vmem [shape: f32[1,384], index: 13, kind: input, shape index: {}]   ;;  %s3531_s14 = inlined_call_operand.hbm [shape: f32[8,384], index: 14, kind: output, shape index: {0}]   ;;  %s3532_s15 = inlined_call_operand.hbm [shape: f32[8,128], index: 15, kind: output, shape index: {1}]   ;;  %s3533_s16 = inlined_call_operand.hbm [shape: f32[8,128], index: 16, kind: output, shape index: {2}, may-alias: {1,16}]  }
   0x1   :  { %3539 = sst [smem:[#allocation28_spill]] %s3517_s0 }
   0x2   :  { %3540 = sst [smem:[#allocation29_spill]] %s3518_s1 }
   0x3   :  { %3541 = sst [smem:[#allocation30_spill]] %s3519_s2 }
   0x4   :  { %3542 = sst [smem:[#allocation31_spill]] %s3520_s3 }
   0x5   :  { %3543 = sst [smem:[#allocation32_spill]] %s3521_s4 }
   0x6   :  { %3544 = sst [smem:[#allocation33_spill]] %s3522_s5 }
   0x7   :  { %3545 = sst [smem:[#allocation34_spill]] %s3526_s9 }
   0x8   :  { %3546 = sst [smem:[#allocation35_spill]] %s3527_s10 }
   0x9   :  { %3547 = sst [smem:[#allocation36_spill]] %s3528_s11 }
   0xa   :  { %3548 = sst [smem:[#allocation37_spill]] %s3531_s14 }
   0xb   :  { %3549 = sst [smem:[#allocation38_spill]] %s3532_s15 }
   0xc   :  { %3550 = sst [smem:[#allocation39_spill]] %s3533_s16 }
   0xd   :  { %22 = vsyncpa [#allocation6], 0 }
   0xe   :  { %23 = vsyncpa [#allocation9], 0 }
   0xf   :  { %24 = vsyncpa [#allocation12], 0 }
  0x10   :  { %25 = vsyncpa [#allocation15], 0 }
  0x11   :  { %26 = vsyncpa [#allocation7], 0 }
  0x12   :  { %28 = vsyncpa [#allocation7 + $0x1], 0 }
  0x13   :  { %29 = vsyncpa [#allocation19], 0  ;;  %s3178_s21 = smov 0   ;;  %s3180_s22 = smov 0  }
  0x14   :  { %s3182_s23 = smov 0   ;;  %s3184_s24 = smov 0  }
  0x15 LB: > { %s3551_s1 = sld [smem:[#allocation29_spill]]  ;;  %s3202_s28 = sadd.s32 4294967295, %s3075_s24   ;;  %s3075_s24 = sphi %s3184_s24, %s3581_s24   ;;  %s3071_s23 = sphi %s3182_s23, %s3580_s23   ;;  %s3067_s22 = sphi %s3180_s22, %s3579_s22   ;;  %s3063_s21 = sphi %s3178_s21, %s3578_s21  }
  0x16   : > { %p2095_p0 = scmp.ge.s32.totalorder %s3075_s24, 1  ;;  %p308_p1 = scmp.eq.s32.totalorder %s3202_s28, 0 }
  0x17   : > { %p412_p2 = scmp.lt.s32.totalorder %s3075_s24, 4  ;;  %s3077_s30 = smov [#allocation5]  }
  0x18   : > { %s429_s0 = sshll.u32 %s3077_s30, 4  ;;  %s3553_s2 = sld [smem:[#allocation30_spill]]  ;;  %s430_s0 = int_to_ptr.vmem [resolvable:$true] %s429_s0 }
  0x19   : > { %p3208_p4 = pnand %p2095_p0, %p412_p2  ;;  %s3078_s25 = smov [#allocation8]  }
  0x1a   : > { %s440_s26 = sshll.u32 %s3078_s25, 4  ;;  %s3536_s30 = smov 64   ;;  %s441_s26 = int_to_ptr.vmem [resolvable:$true] %s440_s26 }
  0x1b   : > { %s427_s27 = sshll.u32 %s3551_s1, 4  ;;  %p2574_p5 = pneg %p3208_p4  ;;  %s428_s27 = int_to_ptr.hbm [resolvable:$true] %s427_s27 }
  0x1c   : > { %s3537_s1 = smov 4   ;;  %s3555_s5 = sld [smem:[#allocation33_spill]] }
  0x1d   : > { %p3219_p6 = pnand %p2574_p5, %p308_p1  ;;  %s3081_s16 = smov [#allocation11]  }
  0x1e   : > { %s438_s19 = sshll.u32 %s3553_s2, 4  ;;  %s471_s14 = sshll.u32 %s3081_s16, 4  ;;  %s439_s19 = int_to_ptr.hbm [resolvable:$true] %s438_s19  ;;  %s472_s14 = int_to_ptr.vmem [resolvable:$true] %s471_s14 }
  0x1f   : > { %2577 = dma.hbm_to_vmem [thread:$0]  (!%p3219_p6), %s428_s27, 128, %s430_s0, [#allocation6]  }
  0x20   : > { %2580 = dma.hbm_to_vmem [thread:$0]  (!%p3219_p6), %s439_s19, 1024, %s441_s26, [#allocation9], %s3536_s30, %s3536_s30, %s3537_s1  }
  0x21   : > { %s3556_s4 = sld [smem:[#allocation32_spill]]  ;;  %s3535_s0 = smov 192  }
  0x22   : > { %s469_s2 = sshll.u32 %s3555_s5, 4  ;;  %s3083_s11 = smov 12   ;;  %s470_s2 = int_to_ptr.hbm [resolvable:$true] %s469_s2 }
  0x23   : > { %2586 = dma.hbm_to_vmem [thread:$0]  (!%p3219_p6), %s470_s2, 3072, %s472_s14, [#allocation12], %s3535_s0, %s3535_s0, %s3083_s11  }
  0x24   : > { %s3084_s19 = smov [#allocation10]   ;;  %s3557_s9 = sld [smem:[#allocation34_spill]] }
  0x25   : > { %s457_s26 = sshll.u32 %s3084_s19, 4  ;;  %s3558_s10 = sld [smem:[#allocation35_spill]]  ;;  %s458_s26 = int_to_ptr.vmem [resolvable:$true] %s457_s26 }
  0x26   : > { %s3085_s25 = smov [#allocation13]   ;;  %s3262_s17 = sadd.s32 1, %s3075_s24  }
  0x27   : > { %s455_s27 = sshll.u32 %s3556_s4, 4  ;;  %s494_s19 = sshll.u32 %s3085_s25, 4  ;;  %s456_s27 = int_to_ptr.hbm [resolvable:$true] %s455_s27  ;;  %s495_s19 = int_to_ptr.vmem [resolvable:$true] %s494_s19 }
  0x28   : > { %2583 = dma.hbm_to_vmem [thread:$0]  (!%p3219_p6), %s456_s27, 3072, %s458_s26, [#allocation9], %s3535_s0, %s3535_s0, %s3083_s11  }
  0x29   : > { %s3086_s11 = smov [#allocation14]   ;;  %s2094_s26 = sadd.s32 4294967294, %s3075_s24  }
  0x2a   : > { %s492_s16 = sshll.u32 %s3557_s9, 4  ;;  %s508_s27 = sshll.u32 %s3086_s11, 4  ;;  %s493_s16 = int_to_ptr.hbm [resolvable:$true] %s492_s16  ;;  %s509_s27 = int_to_ptr.vmem [resolvable:$true] %s508_s27 }
  0x2b   : > { %s506_s14 = sshll.u32 %s3558_s10, 4  ;;  %s291_s18 = ssub.s32 %s3075_s24, %s3262_s17  ;;  %s507_s14 = int_to_ptr.hbm [resolvable:$true] %s506_s14 }
  0x2c   : > { %2589 = dma.hbm_to_vmem [thread:$0]  (!%p3219_p6), %s493_s16, 1024, %s495_s19, [#allocation12], %s3536_s30, %s3536_s30, %s3537_s1  }
  0x2d   : > { %2592 = dma.hbm_to_vmem [thread:$0]  (!%p3219_p6), %s507_s14, 1024, %s509_s27, [#allocation15], %s3536_s30, %s3536_s30, %s3537_s1  }
  0x2e   : > { %s294_s15 = sadd.s32 1, %s3071_s23  ;;  %p292_p7 = scmp.eq.s32.totalorder %s291_s18, 0 }
  0x2f   : > { %p301_p8 = scmp.ne.s32.totalorder %s3071_s23, %s3067_s22  ;;  %p302_p9 = scmp.eq.s32.totalorder %s3075_s24, 0 }
  0x30   : > { %p307_p10 = scmp.ne.s32.totalorder %s3067_s22, %s3063_s21  ;;  %p3538_p12 = scmp.eq.s32.totalorder %s3202_s28, 2 }
  0x31   : > { %s3273_s16 = scalar_select %p292_p7, %s3071_s23, %s294_s15  }
  0x32   : > { %p3277_p11 = por %p308_p1, %p307_p10  ;;  %p363_p13 = scmp.eq.s32.totalorder %s2094_s26, 2 }
  0x33   : > { %p3282_p0 = por %p302_p9, %p301_p8  ;;  %p2607_p2 = scmp.lt.s32.totalorder %s3075_s24, 3 }
  0x34   : > { %p3289_p5 = por %p3538_p12, %p301_p8  ;;  %p3293_p6 = por %p363_p13, %p307_p10 }
  0x35   : > { %s525_s19 = sand.u32 1, %s3075_s24   ;;  %s527_s11 = sand.u32 1, %s3071_s23  }
  0x36   : > { %s2103_s27 = sshll.u32 %s527_s11, 6  ;;  %s2104_s18 = sshll.u32 %s3075_s24, 2 }
  0x37   : > { %s533_s0 = scalar_lea.hbm %s3529_s12, %s2104_s18  ;;  %s529_s1 = scalar_lea.vmem [#allocation16], %s2103_s27 }
  0x38   : > { %s534_s30 = sshll.u32 %s533_s0, 4  ;;  %s536_s4 = sshll.u32 %s529_s1, 4  ;;  %s535_s30 = int_to_ptr.hbm [resolvable:$true] %s534_s30  ;;  %s537_s4 = int_to_ptr.vmem [resolvable:$true] %s536_s4 }
  0x39   : > { %p3307_p7 = pnand %p2607_p2, %p3282_p0  ;;  %s526_s9 = scalar_lea.sflag [#allocation6], %s525_s19 }
  0x3a   : > { %s2903_s10 = sshra.s32 %s535_s30, 4  ;;  %s2910_s27 = scalar_lea.hbm %s3529_s12, 192  ;;  %s2904_s10 = int_to_ptr.hbm [resolvable:$true] %s2903_s10 }
  0x3b   : > { %s2905_s11 = scalar_lea.hbm %s2904_s10, 64  ;;  %p2907_p9 = pneg %p3307_p7 }
  0x3c   : > { %p2906_p8 = scmp.ne.s32.totalorder %s2904_s10, %s2905_s11  ;;  %p2911_p0 = scmp.lt.s32.totalorder %s2904_s10, %s3529_s12 }
  0x3d   : > { %p2912_p2 = scmp.lt.s32.totalorder %s2910_s27, %s2905_s11 }
  0x3e   : > { %p2908_p10 = pnand %p2907_p9, %p2906_p8 }
  0x3f   : > { %p2913_p12 = por %p2912_p2, %p2911_p0 }
  0x40   : > { %p2909_p13 = pneg %p2908_p10 }
  0x42   : > { %p2914_p3 = pnand %p2913_p12, %p2909_p13 }
  0x44   : > { %2917 = shalt.err (!%p2914_p3)
}
  0x45   : > { %s3564_s19 = smov 4   ;;  %s3565_s26 = smov 64  }
  0x46   : > { %s3566_s15 = smov 192   ;;  %554 = sbr.rel (%p3208_p4) target bundleno = 1752 (0x6d8), region = 76 }
  0x47   : > { %2596 = dma.hbm_to_vmem [thread:$0]  (!%p3307_p7), %s535_s30, 1024, %s537_s4, %s526_s9, %s3566_s15, %s3565_s26, %s3564_s19  }
  0x4b   : > { %3034 = dma.done.wait (%p308_p1), [#allocation6], 128  }
  0x4c   : > { %3036 = vsyncadd (%p308_p1), [#allocation6], 4294967168 }
  0x4d   : > { %3038 = dma.done.wait (%p308_p1), [#allocation9], 4096  }
  0x4e   : > { %3040 = vsyncadd (%p308_p1), [#allocation9], 4294963200 }
  0x4f   : > { %3042 = dma.done.wait (%p308_p1), [#allocation12], 4096  }
  0x50   : > { %3044 = vsyncadd (%p308_p1), [#allocation12], 4294963200 }
  0x51   : > { %3046 = dma.done.wait (%p308_p1), [#allocation15], 1024  }
  0x52   : > { %3048 = vsyncadd (%p308_p1), [#allocation15], 4294966272  ;;  %s586_s4 = sand.u32 1, %s3202_s28   ;;  %s3344_s5 = sand.u32 1, %s3067_s22  }
  0x53   : > { %s2112_s9 = sshll.u32 %s3344_s5, 6  ;;  %s587_s10 = scalar_lea.sflag [#allocation6], %s586_s4 }
  0x54   : > { %s3347_s29 = scalar_lea.vmem [#allocation16], %s2112_s9 }
  0x55   : > { %3050 = dma.done.wait (%p3277_p11), %s587_s10, 1024  }
  0x56   : > { %3052 = vsyncadd (%p3277_p11), %s587_s10, 4294966272  ;;  %s2113_s30 = sshll.u32 %s3344_s5, 3  ;;  %p643_p1 = scmp.lt.s32.totalorder %s3202_s28, 2 }
  0x57   : > { %s3362_s2 = scalar_lea.vmem [#allocation17], %s2113_s30  ;;  %p3567_p3 = scmp.ne.s32.totalorder %s3202_s28, 0 }
  0x58   : > { %s3356_s11 = scalar_select %p643_p1, %s3202_s28, 2 }
  0x59   : > { %650 = sbr.rel (%p3567_p3) target bundleno = 1061 (0x425), region = 108  ;;  %s3568_s19 = sld [smem:[#allocation28_spill]] (!%p3567_p3) }
  0x5a   : > { %s645_s27 = scalar_lea.vmem %s3530_s13, %s3356_s11  ;;  %s3569_s3 = sld [smem:[#allocation31_spill]] (!%p3567_p3) }
  0x5e   : > { %v2201_v0 = vld [vmem:[#allocation10 + $0xa8] sm:$0xf]  ;;  %v2488_v1 = vld [vmem:[#allocation10 + $0xb0] sm:$0xf0]  ;;  %v2189_v5 = vld [vmem:[#allocation10 + $0x90] sm:$0xf] }
  0x5f   : > { %v2297_v2 = vld [vmem:[#allocation11 + $0xa8] sm:$0xf]  ;;  %v2202_v3 = vor.u32 %v2488_v1, %v2201_v0  ;;  %v2512_v4 = vld [vmem:[#allocation11 + $0xb0] sm:$0xf0]  ;;  %v2485_v6 = vld [vmem:[#allocation10 + $0x98] sm:$0xf0] }
  0x60   : > { %v2298_v7 = vor.u32 %v2512_v4, %v2297_v2  ;;  %v2285_v8 = vld [vmem:[#allocation11 + $0x90] sm:$0xf]  ;;  %v2509_v9 = vld [vmem:[#allocation11 + $0x98] sm:$0xf0]  ;;  %v2487_v10 = vld [vmem:[#allocation10 + $0xac] sm:$0xf]  ;;  %v2190_v11 = vor.u32 %v2485_v6, %v2189_v5 }
  0x61   : > { %829 = vmatpush.bf16.msra.mxu0 %v2202_v3  ;;  %v2203_v12 = vld [vmem:[#allocation10 + $0xb4] sm:$0xf0]  ;;  %v2286_v13 = vor.u32 %v2509_v9, %v2285_v8  ;;  %v2482_v16 = vld [vmem:[#allocation10 + $0x80] sm:$0xf0]  ;;  %v2484_v17 = vld [vmem:[#allocation10 + $0x94] sm:$0xf] }
  0x62   : > { %1029 = vmatpush.bf16.msra.mxu3 %v2298_v7  ;;  %v2206_v14 = vor.u32 %v2487_v10, %v2203_v12  ;;  %v2177_v15 = vld [vmem:[#allocation10 + $0x78] sm:$0xf]  ;;  %v2506_v19 = vld [vmem:[#allocation11 + $0x80] sm:$0xf0]  ;;  %v2191_v20 = vld [vmem:[#allocation10 + $0x9c] sm:$0xf0] }
  0x63   : > { %v2273_v18 = vld [vmem:[#allocation11 + $0x78] sm:$0xf]  ;;  %v2194_v21 = vor.u32 %v2484_v17, %v2191_v20  ;;  %v2178_v22 = vor.u32 %v2482_v16, %v2177_v15  ;;  %v2481_v23 = vld [vmem:[#allocation10 + $0x7c] sm:$0xf]  ;;  %v2179_v24 = vld [vmem:[#allocation10 + $0x84] sm:$0xf0] }
  0x64   : > { %842 = vmatpush.bf16.msra.mxu1 %v2206_v14  ;;  %v2274_v25 = vor.u32 %v2506_v19, %v2273_v18  ;;  %v2165_v26 = vld [vmem:[#allocation10 + $0x60] sm:$0xf]  ;;  %v2479_v27 = vld [vmem:[#allocation10 + $0x68] sm:$0xf0]  ;;  %v2182_v30 = vor.u32 %v2481_v23, %v2179_v24  ;;  %v2478_v32 = vld [vmem:[#allocation10 + $0x64] sm:$0xf] }
  0x65   : > { %830 = vmatpush.bf16.msra.mxu0 %v2190_v11  ;;  %v2261_v28 = vld [vmem:[#allocation11 + $0x60] sm:$0xf]  ;;  %v2503_v29 = vld [vmem:[#allocation11 + $0x68] sm:$0xf0]  ;;  %v2166_v31 = vor.u32 %v2479_v27, %v2165_v26  ;;  %v2167_v33 = vld [vmem:[#allocation10 + $0x6c] sm:$0xf0] }
  0x66   : > { %1030 = vmatpush.bf16.msra.mxu3 %v2286_v13  ;;  %v2262_v34 = vor.u32 %v2503_v29, %v2261_v28  ;;  %v2153_v35 = vld [vmem:[#allocation10 + $0x48] sm:$0xf]  ;;  %v2476_v36 = vld [vmem:[#allocation10 + $0x50] sm:$0xf0]  ;;  %v2170_v39 = vor.u32 %v2478_v32, %v2167_v33  ;;  %v2141_v41 = vld [vmem:[#allocation10 + $0x30] sm:$0xf] }
  0x67   : > { %v2249_v37 = vld [vmem:[#allocation11 + $0x48] sm:$0xf]  ;;  %v2500_v38 = vld [vmem:[#allocation11 + $0x50] sm:$0xf0]  ;;  %v2154_v40 = vor.u32 %v2476_v36, %v2153_v35  ;;  %v2475_v42 = vld [vmem:[#allocation10 + $0x4c] sm:$0xf] }
  0x68   : > { %843 = vmatpush.bf16.msra.mxu1 %v2194_v21  ;;  %v2155_v43 = vld [vmem:[#allocation10 + $0x54] sm:$0xf0]  ;;  %v2250_v44 = vor.u32 %v2500_v38, %v2249_v37  ;;  %v2473_v45 = vld [vmem:[#allocation10 + $0x38] sm:$0xf0]  ;;  %v2209_v46 = vld [vmem:[#allocation10 + $0xb0] sm:$0xf] }
  0x69   : > { %831 = vmatpush.bf16.msra.mxu0 %v2178_v22  ;;  %v2489_v47 = vld [vmem:[#allocation10 + $0xb8] sm:$0xf0]  ;;  %v2237_v48 = vld [vmem:[#allocation11 + $0x30] sm:$0xf]  ;;  %v2158_v51 = vor.u32 %v2475_v42, %v2155_v43  ;;  %v2197_v52 = vld [vmem:[#allocation10 + $0x98] sm:$0xf]  ;;  %v2142_v53 = vor.u32 %v2473_v45, %v2141_v41 }
  0x6a   : > { %1031 = vmatpush.bf16.msra.mxu3 %v2274_v25  ;;  %v2497_v49 = vld [vmem:[#allocation11 + $0x38] sm:$0xf0]  ;;  %v2210_v50 = vor.u32 %v2489_v47, %v2209_v46  ;;  %v2472_v54 = vld [vmem:[#allocation10 + $0x34] sm:$0xf]  ;;  %v2143_v55 = vld [vmem:[#allocation10 + $0x3c] sm:$0xf0] }
  0x6b   : > { %v2486_v56 = vld [vmem:[#allocation10 + $0xa0] sm:$0xf0]  ;;  %v2238_v57 = vor.u32 %v2497_v49, %v2237_v48  ;;  %v2129_v58 = vld [vmem:[#allocation10 + $0x18] sm:$0xf]  ;;  %v2185_v61 = vld [vmem:[#allocation10 + $0x80] sm:$0xf]  ;;  %v2146_v1 = vor.u32 %v2472_v54, %v2143_v55 }
  0x6c   : > { %844 = vmatpush.bf16.msra.mxu1 %v2182_v30  ;;  %855 = vmatpush.bf16.msra.mxu2 %v2210_v50  ;;  %v2470_v59 = vld [vmem:[#allocation10 + $0x20] sm:$0xf0]  ;;  %v2198_v60 = vor.u32 %v2486_v56, %v2197_v52  ;;  %v2225_v62 = vld [vmem:[#allocation11 + $0x18] sm:$0xf]  ;;  %v2483_v0 = vld [vmem:[#allocation10 + $0x88] sm:$0xf0] }
  0x6d   : > { %832 = vmatpush.bf16.msra.mxu0 %v2166_v31  ;;  %v2494_v63 = vld [vmem:[#allocation11 + $0x20] sm:$0xf0]  ;;  %v2117_v2 = vld [vmem:[#allocation10] sm:$0xf]  ;;  %v2130_v3 = vor.u32 %v2470_v59, %v2129_v58  ;;  %v2467_v4 = vld [vmem:[#allocation10 + $0x8] sm:$0xf0]  ;;  %v2186_v7 = vor.u32 %v2483_v0, %v2185_v61 }
  0x6e   : > { %1032 = vmatpush.bf16.msra.mxu3 %v2262_v34  ;;  %v2469_v5 = vld [vmem:[#allocation10 + $0x1c] sm:$0xf]  ;;  %v2131_v6 = vld [vmem:[#allocation10 + $0x24] sm:$0xf0]  ;;  %v2226_v8 = vor.u32 %v2494_v63, %v2225_v62  ;;  %v2213_v9 = vld [vmem:[#allocation11] sm:$0xf]  ;;  %v2118_v16 = vor.u32 %v2467_v4, %v2117_v2 }
  0x6f   : > { %v2173_v10 = vld [vmem:[#allocation10 + $0x68] sm:$0xf]  ;;  %v2480_v11 = vld [vmem:[#allocation10 + $0x70] sm:$0xf0]  ;;  %v2491_v12 = vld [vmem:[#allocation11 + $0x8] sm:$0xf0]  ;;  %v2134_v15 = vor.u32 %v2469_v5, %v2131_v6 }
  0x70   : > { %845 = vmatpush.bf16.msra.mxu1 %v2170_v39  ;;  %856 = vmatpush.bf16.msra.mxu2 %v2198_v60  ;;  %v2511_v13 = vld [vmem:[#allocation11 + $0xac] sm:$0xf]  ;;  %v2299_v14 = vld [vmem:[#allocation11 + $0xb4] sm:$0xf0]  ;;  %v2466_v18 = vld [vmem:[#allocation10 + $0x4] sm:$0xf]  ;;  %v2174_v20 = vor.u32 %v2480_v11, %v2173_v10  ;;  %v2214_v21 = vor.u32 %v2491_v12, %v2213_v9 }
  0x71   : > { %833 = vmatpush.bf16.msra.mxu0 %v2154_v40  ;;  %v3366_v17 = vld [vmem:[#allocation5] sm:$0xff]  ;;  %v2119_v19 = vld [vmem:[#allocation10 + $0xc] sm:$0xf0]  ;;  %v2302_v22 = vor.u32 %v2511_v13, %v2299_v14  ;;  %v2508_v23 = vld [vmem:[#allocation11 + $0x94] sm:$0xf]  ;;  %vm1137_vm8 = vcmask 1040384  }
  0x72   : > { %1033 = vmatpush.bf16.msra.mxu3 %v2250_v44  ;;  %v2305_v24 = vld [vmem:[#allocation11 + $0xb0] sm:$0xf]  ;;  %v2513_v25 = vld [vmem:[#allocation11 + $0xb8] sm:$0xf0]  ;;  %v2287_v26 = vld [vmem:[#allocation11 + $0x9c] sm:$0xf0]  ;;  %v2122_v29 = vor.u32 %v2466_v18, %v2119_v19  ;;  %v3375_v31 = vpack.c.bf16 %v3366_v17, %v3366_v17 }
  0x73   : > { %v2161_v27 = vld [vmem:[#allocation10 + $0x50] sm:$0xf]  ;;  %v2477_v28 = vld [vmem:[#allocation10 + $0x58] sm:$0xf0]  ;;  %v3371_v30 = vld [vmem:[%s3568_s19] sm:$0xf]  ;;  %v2306_v32 = vor.u32 %v2513_v25, %v2305_v24  ;;  %v2290_v36 = vor.u32 %v2508_v23, %v2287_v26 }
  0x74   : > { %846 = vmatpush.bf16.msra.mxu1 %v2158_v51  ;;  %857 = vmatpush.bf16.msra.mxu2 %v2186_v7  ;;  %v2505_v33 = vld [vmem:[#allocation11 + $0x7c] sm:$0xf]  ;;  %v2275_v34 = vld [vmem:[#allocation11 + $0x84] sm:$0xf0]  ;;  %v2293_v35 = vld [vmem:[#allocation11 + $0x98] sm:$0xf]  ;;  %v2162_v38 = vor.u32 %v2477_v28, %v2161_v27 }
  0x75   : > { %834 = vmatpush.bf16.msra.mxu0 %v2142_v53  ;;  %v2510_v37 = vld [vmem:[#allocation11 + $0xa0] sm:$0xf0]  ;;  %v2149_v39 = vld [vmem:[#allocation10 + $0x38] sm:$0xf]  ;;  %v2278_v42 = vor.u32 %v2505_v33, %v2275_v34  ;;  %v2281_v44 = vld [vmem:[#allocation11 + $0x80] sm:$0xf] }
  0x76   : > { %1034 = vmatpush.bf16.msra.mxu3 %v2238_v57  ;;  %v2474_v40 = vld [vmem:[#allocation10 + $0x40] sm:$0xf0]  ;;  %v2294_v41 = vor.u32 %v2510_v37, %v2293_v35  ;;  %v2507_v45 = vld [vmem:[#allocation11 + $0x88] sm:$0xf0]  ;;  %v2263_v47 = vld [vmem:[#allocation11 + $0x6c] sm:$0xf0] }
  0x77   : > { %v2502_v43 = vld [vmem:[#allocation11 + $0x64] sm:$0xf]  ;;  %v2150_v46 = vor.u32 %v2474_v40, %v2149_v39  ;;  %v2137_v48 = vld [vmem:[#allocation10 + $0x20] sm:$0xf]  ;;  %v2471_v49 = vld [vmem:[#allocation10 + $0x28] sm:$0xf0]  ;;  %v2282_v50 = vor.u32 %v2507_v45, %v2281_v44 }
  0x78   : > { %847 = vmatpush.bf16.msra.mxu1 %v2146_v1  ;;  %858 = vmatpush.bf16.msra.mxu2 %v2174_v20  ;;  %v2266_v51 = vor.u32 %v2502_v43, %v2263_v47  ;;  %v2499_v52 = vld [vmem:[#allocation11 + $0x4c] sm:$0xf]  ;;  %v2269_v53 = vld [vmem:[#allocation11 + $0x68] sm:$0xf]  ;;  %v2504_v54 = vld [vmem:[#allocation11 + $0x70] sm:$0xf0]  ;;  %v2138_v55 = vor.u32 %v2471_v49, %v2137_v48 }
  0x79   : > { %835 = vmatpush.bf16.msra.mxu0 %v2130_v3  ;;  %v2251_v56 = vld [vmem:[#allocation11 + $0x54] sm:$0xf0]  ;;  %v2125_v57 = vld [vmem:[#allocation10 + $0x8] sm:$0xf]  ;;  %v2468_v58 = vld [vmem:[#allocation10 + $0x10] sm:$0xf0]  ;;  %v2270_v59 = vor.u32 %v2504_v54, %v2269_v53 }
  0x7a   : > { %1035 = vmatpush.bf16.msra.mxu3 %v2226_v8  ;;  %v2254_v60 = vor.u32 %v2499_v52, %v2251_v56  ;;  %v2257_v61 = vld [vmem:[#allocation11 + $0x50] sm:$0xf]  ;;  %v2501_v62 = vld [vmem:[#allocation11 + $0x58] sm:$0xf0]  ;;  %v2126_v63 = vor.u32 %v2468_v58, %v2125_v57  ;;  %v2496_v0 = vld [vmem:[#allocation11 + $0x34] sm:$0xf] }
  0x7b   : > { %v2239_v1 = vld [vmem:[#allocation11 + $0x3c] sm:$0xf0]  ;;  %v2258_v2 = vor.u32 %v2501_v62, %v2257_v61  ;;  %v2245_v4 = vld [vmem:[#allocation11 + $0x38] sm:$0xf]  ;;  %v2498_v5 = vld [vmem:[#allocation11 + $0x40] sm:$0xf0] }
  0x7c   : > { %848 = vmatpush.bf16.msra.mxu1 %v2134_v15  ;;  %859 = vmatpush.bf16.msra.mxu2 %v2162_v38  ;;  %v2242_v3 = vor.u32 %v2496_v0, %v2239_v1  ;;  %v2493_v6 = vld [vmem:[#allocation11 + $0x1c] sm:$0xf]  ;;  %v2227_v7 = vld [vmem:[#allocation11 + $0x24] sm:$0xf0]  ;;  %v2246_v8 = vor.u32 %v2498_v5, %v2245_v4  ;;  %v2233_v10 = vld [vmem:[#allocation11 + $0x20] sm:$0xf] }
  0x7d   : > { %836 = vmatpush.bf16.msra.mxu0 %v2118_v16  ;;  %v2230_v9 = vor.u32 %v2493_v6, %v2227_v7  ;;  %v2495_v11 = vld [vmem:[#allocation11 + $0x28] sm:$0xf0]  ;;  %v2490_v12 = vld [vmem:[#allocation11 + $0x4] sm:$0xf]  ;;  %v2215_v13 = vld [vmem:[#allocation11 + $0xc] sm:$0xf0] }
  0x7e   : > { %1036 = vmatpush.bf16.msra.mxu3 %v2214_v21  ;;  %v2234_v14 = vor.u32 %v2495_v11, %v2233_v10  ;;  %v2218_v15 = vor.u32 %v2490_v12, %v2215_v13  ;;  %v2221_v16 = vld [vmem:[#allocation11 + $0x8] sm:$0xf]  ;;  %v2492_v18 = vld [vmem:[#allocation11 + $0x10] sm:$0xf0]  ;;  %v1070_v21 = vld [vmem:[%s3523_s6] sm:$0x3] }
  0x7f   : > { %v2222_v19 = vor.u32 %v2492_v18, %v2221_v16  ;;  %v1072_v23 = vperm.slane %v1070_v21, 0  ;;  %v2458_v45 = vld [vmem:[#allocation8] sm:$0xff]  ;;  %v3395_v61 = vld [vmem:[#allocation8 + $0x18] sm:$0xff]  ;;  %vm1142_vm9 = vcmask 1041409   ;;  %vm1146_vm10 = vcmask 1042434   ;;  %s3570_s19 = sld [smem:[#allocation36_spill]] }
  0x80   : > { %849 = vmatpush.bf16.msra.mxu1 %v2122_v29  ;;  %837 = vmatmul.bf16.vlgmr.msra.gmra.mxu0 %v3371_v30  ;;  %v2667_v52 = vld [vmem:[%s3525_s8] ss:$0 sm:$0xff]  ;;  %vm1150_vm11 = vcmask 1043459   ;;  %vm1339_vm12 = vcmask 122880   ;;  %vm1436_vm13 = vcmask 130048   ;;  %vm1628_vm14 = vcmask 1044484  }
  0x81   : > { %1042 = vmatpush.bf16.msrb.mxu0 %v2302_v22  ;;  %1037 = vmatmul.bf16.vlgmr.msra.gmra.mxu3 %v3375_v31  ;;  %v2668_v58 = vld [vmem:[%s3524_s7] ss:$0 sm:$0xff]  ;;  %vm1631_vm15 = vcmask 1045509  }
  0x82   : > { %860 = vmatpush.bf16.msra.mxu2 %v2150_v46  ;;  %v2459_v46 = vld [vmem:[#allocation8 + $0x8] sm:$0xff]  ;;  %v2462_v11 = vld [vmem:[#allocation8 + $0x20] sm:$0xff] }
  0x83   : > { %850 = vmatmul.bf16.vlgmr.msra.gmra.mxu1 %v3371_v30  ;;  %1201 = vmatpush.bf16.xpose.msrb.mxu3 %v2459_v46 }
  0x84   : > { %1055 = vmatpush.bf16.msrb.mxu1 %v2306_v32 }
  0x85   : > { %1043 = vmatpush.bf16.msrb.mxu0 %v2290_v36 }
  0x86   : > { %861 = vmatpush.bf16.msra.mxu2 %v2138_v55 }
  0x88   : > { %1056 = vmatpush.bf16.msrb.mxu1 %v2294_v41 }
  0x89   : > { %1044 = vmatpush.bf16.msrb.mxu0 %v2278_v42 }
  0x8a   : > { %862 = vmatpush.bf16.msra.mxu2 %v2126_v63 }
  0x8b   : > { %1245 = vmatpush.bf16.xpose.msra.mxu3 %v3395_v61 }
  0x8c   : > { %1057 = vmatpush.bf16.msrb.mxu1 %v2282_v50 }
  0x8d   : > { %1045 = vmatpush.bf16.msrb.mxu0 %v2266_v51  ;;  %863 = vmatmul.bf16.vlgmr.msra.gmra.mxu2 %v3371_v30 }
  0x8e   : > { %1179 = vmatpush.bf16.xpose.msrb.mxu2 %v2458_v45 }
  0x90   : > { %1058 = vmatpush.bf16.msrb.mxu1 %v2270_v59  ;;  %v3392_v59 = vld [vmem:[#allocation8 + $0x10] sm:$0xff] }
  0x91   : > { %1046 = vmatpush.bf16.msrb.mxu0 %v2254_v60 }
  0x94   : > { %1059 = vmatpush.bf16.msrb.mxu1 %v2258_v2 }
  0x95   : > { %1047 = vmatpush.bf16.msrb.mxu0 %v2242_v3 }
  0x96   : > { %1223 = vmatpush.bf16.xpose.msra.mxu2 %v3392_v59 }
  0x98   : > { %1060 = vmatpush.bf16.msrb.mxu1 %v2246_v8 }
  0x99   : > { %1048 = vmatpush.bf16.msrb.mxu0 %v2230_v9 }
  0x9c   : > { %1061 = vmatpush.bf16.msrb.mxu1 %v2234_v14  ;;  %v2463_v14 = vld [vmem:[#allocation8 + $0x28] sm:$0xff] }
  0x9d   : > { %1049 = vmatpush.bf16.msrb.mxu0 %v2218_v15 }
  0xa0   : > { %1050 = vmatmul.bf16.vlgmr.msrb.gmra.mxu0 %v3375_v31  ;;  %1062 = vmatpush.bf16.msrb.mxu1 %v2222_v19 }
  0xa1   : > { %1447 = vmatpush.bf16.msra.mxu0 %v2458_v45 }
  0xa3   : > { %1063 = vmatmul.bf16.vlgmr.msrb.gmra.mxu1 %v3375_v31  ;;  %v1073_v31 = vperm.slane %v1070_v21, 1 }
  0xa4   : > { %1463 = vmatpush.bf16.msra.mxu1 %v2459_v46 }
  0xa5   : > { %1511 = vmatpush.bf16.msrb.mxu0 %v2462_v11 }
  0xa8   : > { %1527 = vmatpush.bf16.msrb.mxu1 %v2463_v14 }
  0xfd   : > { %v838_v20 = vpop.f32.mrf.mxu0 }
 0x100   : > { %v851_v22 = vpop.f32.mrf.mxu1 }
 0x104   : > { %v1038_v24 = vpop.f32.mrf.mxu3 }
 0x105   : > { %v1068_v25 = vadd.f32 %v1038_v24, %v838_v20  ;;  %v840_v26 = vpop.f32.mrf.mxu0 }
 0x107   : > { %v1076_v27 = vadd.f32 %v1072_v23, %v1068_v25 }
 0x108   : > { %v853_v28 = vpop.f32.mrf.mxu1 }
 0x109   : > { %v2307_v29 = vmul.f32 -1.442695, %v1076_v27 }
 0x10b   : > { %2670 = vpow2.f32 %v2307_v29 }
 0x10c   : > { %v1040_v30 = vpop.f32.mrf.mxu3 }
 0x110   : > { %v864_v34 = vpop.f32.mrf.mxu2 }
 0x111   : > { %v2671_v32 = vpop.eup %2670  ;;  %v1120_v63 = vadd.f32 %v2668_v58, %v864_v34  ;;  %v2465_v34 = vld [vmem:[#allocation8 + $0x38] sm:$0xff] }
 0x112   : > { %v1084_v33 = vadd.f32 1.0, %v2671_v32  ;;  %v2464_v32 = vld [vmem:[#allocation8 + $0x30] sm:$0xff] }
 0x114   : > { %2672 = vrcp.f32 %v1084_v33  ;;  %vm1091_vm0 = vweird.f32 %v1084_v33  ;;  %v1097_v49 = vand.u32 2147483648, %v1084_v33  ;;  %v1095_v51 = vand.u32 2147483647, %v1084_v33 }
 0x116   : > { %v1098_v56 = vor.u32 1.1754944e-38, %v1097_v49  ;;  %vm1096_vm3 = vcmp.eq.f32.partialorder %v1095_v51, 8.507059e+37  ;;  %v1162_v49 = vld [vmem:[%s3569_s3] sm:$0x1] }
 0x118   : > { %v866_v39 = vpop.f32.mrf.mxu2 }
 0x11a   : > { %v2673_v35 = vpop.eup %2672 }
 0x11b   : > { %v1087_v38 = vmul.f32 %v2673_v35, %v1084_v33  ;;  %vm1092_vm1 = vweird.f32 %v2673_v35 }
 0x11c   : > { %vm1093_vm2 = vmor %vm1091_vm0, %vm1092_vm1  ;;  %vm1634_vm0 = vcmask 1046534   ;;  %vm1637_vm1 = vcmask 1047559  }
 0x11d   : > { %v1051_v36 = vpop.f32.mrf.mxu0  ;;  %v1088_v42 = vsub.f32 1.0, %v1087_v38 }
 0x11e   : > { %v1069_v37 = vadd.f32 %v1051_v36, %v851_v22 }
 0x11f   : > { %v1089_v44 = vmul.f32 %v2673_v35, %v1088_v42 }
 0x120   : > { %v1077_v40 = vadd.f32 %v1073_v31, %v1069_v37  ;;  %v1064_v41 = vpop.f32.mrf.mxu1 }
 0x121   : > { %v1090_v48 = vadd.f32 %v2673_v35, %v1089_v44  ;;  %v1125_v57 = vadd.f32 %v2667_v52, %v1064_v41 }
 0x122   : > { %v2308_v43 = vmul.f32 -1.442695, %v1077_v40 }
 0x123   : > { %v1094_v55 = vsel %vm1093_vm2, %v2673_v35, %v1090_v48  ;;  %vm1771_vm2 = vcmask 7168  }
 0x124   : > { %2674 = vpow2.f32 %v2308_v43  ;;  %v1099_v60 = vsel %vm1096_vm3, %v1098_v56, %v1094_v55 }
 0x125   : > { %v1053_v47 = vpop.f32.mrf.mxu0  ;;  %v1126_v62 = vmul.f32 %v1125_v57, %v1099_v60 }
 0x127   : > { %v1127_v2 = vadd.f32 %v1126_v62, %v1120_v63 }
 0x128   : > { %v1066_v50 = vpop.f32.mrf.mxu1 }
 0x12a   : > { %v2675_v53 = vpop.eup %2674 }
 0x12b   : > { %v1085_v54 = vadd.f32 1.0, %v2675_v53 }
 0x12d   : > { %2676 = vrcp.f32 %v1085_v54  ;;  %v1112_v4 = vand.u32 2147483648, %v1085_v54  ;;  %v1110_v6 = vand.u32 2147483647, %v1085_v54  ;;  %vm1106_vm5 = vweird.f32 %v1085_v54 }
 0x12e   : > { %2678 = vtanh.f32 %v1127_v2 }
 0x12f   : > { %v1113_v8 = vor.u32 1.1754944e-38, %v1112_v4  ;;  %vm1111_vm7 = vcmp.eq.f32.partialorder %v1110_v6, 8.507059e+37 }
 0x133   : > { %v2677_v0 = vpop.eup %2676 }
 0x134   : > { %v1102_v1 = vmul.f32 %v2677_v0, %v1085_v54  ;;  %vm1107_vm4 = vweird.f32 %v2677_v0  ;;  %v2679_v13 = vpop.eup %2678 }
 0x135   : > { %vm1108_vm6 = vmor %vm1106_vm5, %vm1107_vm4 }
 0x136   : > { %v1103_v3 = vsub.f32 1.0, %v1102_v1 }
 0x138   : > { %v1104_v5 = vmul.f32 %v2677_v0, %v1103_v3 }
 0x13a   : > { %v1105_v7 = vadd.f32 %v2677_v0, %v1104_v5 }
 0x13c   : > { %v1109_v9 = vsel %vm1108_vm6, %v2677_v0, %v1105_v7 }
 0x13d   : > { %v1114_v10 = vsel %vm1111_vm7, %v1113_v8, %v1109_v9 }
 0x13e   : > { %v1129_v12 = vsub.f32 1.0, %v1114_v10  ;;  %v1131_v16 = vmul.f32 %v1114_v10, %v3366_v17 }
 0x140   : > { %v1130_v15 = vmul.f32 %v2679_v13, %v1129_v12 }
 0x142   : > { %v1132_v18 = vadd.f32 %v1131_v16, %v1130_v15 }
 0x144   : > { %1133 = vst [vmem:[#allocation20] sm:$0xff] %v1132_v18  ;;  %v3399_v19 = vpack.c.bf16 %v1132_v18, %v1132_v18 }
 0x146   : > { %v1136_v20 = vrot.slane %v3399_v19, 3 }
 0x148   : > { %v1140_v21 = vsel %vm1137_vm8, %v3399_v19, %v1136_v20  ;;  %v1143_v17 = vsel %vm1142_vm9, %v3399_v19, %v1136_v20  ;;  %v1147_v35 = vsel %vm1146_vm10, %v3399_v19, %v1136_v20  ;;  %v1151_v42 = vsel %vm1150_vm11, %v3399_v19, %v1136_v20 }
 0x149   : > { %v2309_v22 = vpack.i.b16 %v1140_v21, %v1140_v21  ;;  %v1155_v23 = vunpack.i.h.s16 %v1140_v21  ;;  %v1145_v27 = vrot.slane %v1143_v17, 1  ;;  %v1149_v36 = vrot.slane %v1147_v35, 2 }
 0x14a   : > { %v1153_v43 = vrot.slane %v1151_v42, 3 }
 0x14b   : > { %v1164_v24 = vperm.slane %v2309_v22, 0  ;;  %v1185_v25 = vpack.i.b16 %v1155_v23, %v1155_v23  ;;  %v1157_v28 = vunpack.i.h.s16 %v1145_v27  ;;  %v2318_v29 = vpack.i.b16 %v1145_v27, %v1145_v27 }
 0x14c   : > { %v1159_v37 = vunpack.i.h.s16 %v1149_v36  ;;  %v2327_v38 = vpack.i.b16 %v1149_v36, %v1149_v36  ;;  %v1161_v44 = vunpack.i.h.s16 %v1153_v43  ;;  %v2336_v45 = vpack.i.b16 %v1153_v43, %v1153_v43 }
 0x14d   : > { %1180 = vmatmul.bf16.vlgmr.msrb.gmra.mxu2 %v1164_v24  ;;  %v1186_v26 = vperm.slane %v1185_v25, 0  ;;  %v1229_v30 = vpack.i.b16 %v1157_v28, %v1157_v28  ;;  %v1208_v33 = vperm.slane %v2318_v29, 0 }
 0x14e   : > { %1267 = vmatpush.bf16.xpose.msrb.mxu2 %v2462_v11  ;;  %v1273_v39 = vpack.i.b16 %v1159_v37, %v1159_v37  ;;  %v1252_v40 = vperm.slane %v2327_v38, 0  ;;  %v1317_v46 = vpack.i.b16 %v1161_v44, %v1161_v44  ;;  %v1296_v47 = vperm.slane %v2336_v45, 0 }
 0x14f   : > { %1202 = vmatmul.bf16.vlgmr.msrb.gmra.mxu3 %v1186_v26  ;;  %v1230_v31 = vperm.slane %v1229_v30, 0 }
 0x150   : > { %1289 = vmatpush.bf16.xpose.msrb.mxu3 %v2463_v14  ;;  %v1274_v41 = vperm.slane %v1273_v39, 0  ;;  %v1318_v48 = vperm.slane %v1317_v46, 0 }
 0x15d   : > { %1224 = vmatmul.bf16.vlgmr.msra.gmra.mxu2 %v1208_v33 }
 0x15e   : > { %1311 = vmatpush.bf16.xpose.msra.mxu2 %v2464_v32 }
 0x15f   : > { %1246 = vmatmul.bf16.vlgmr.msra.gmra.mxu3 %v1230_v31 }
 0x160   : > { %1333 = vmatpush.bf16.xpose.msra.mxu3 %v2465_v34 }
 0x16d   : > { %1268 = vmatmul.bf16.vlgmr.msrb.gmra.mxu2 %v1252_v40 }
 0x16e   : > { %1479 = vmatpush.bf16.msrb.mxu2 %v3392_v59 }
 0x16f   : > { %1290 = vmatmul.bf16.vlgmr.msrb.gmra.mxu3 %v1274_v41 }
 0x170   : > { %1495 = vmatpush.bf16.msrb.mxu3 %v3395_v61 }
 0x17d   : > { %1312 = vmatmul.bf16.vlgmr.msra.gmra.mxu2 %v1296_v47 }
 0x17e   : > { %1543 = vmatpush.bf16.msra.mxu2 %v2464_v32 }
 0x17f   : > { %1334 = vmatmul.bf16.vlgmr.msra.gmra.mxu3 %v1318_v48 }
 0x180   : > { %1559 = vmatpush.bf16.msra.mxu3 %v2465_v34 }
 0x1d0   : > { %v1181_v50 = vpop.f32.mrf.mxu2 }
 0x1d1   : > { %v1182_v51 = vadd.f32 %v1181_v50, %v1162_v49 }
 0x1d2   : > { %v1203_v52 = vpop.f32.mrf.mxu3 }
 0x1d3   : > { %v1340_v53 = vsel %vm1339_vm12, %v1182_v51, -inf  ;;  %v1204_v54 = vadd.f32 %v1203_v52, %v1162_v49 }
 0x1d4   : > { %1341 = vmax.xlane.f32.xlu1 %v1340_v53 }
 0x1d5   : > { %v1343_v57 = vsel %vm1339_vm12, %v1204_v54, -inf }
 0x1d8   : > { %v1183_v55 = vpop.f32.mrf.mxu2 }
 0x1da   : > { %v1205_v56 = vpop.f32.mrf.mxu3 }
 0x1dc   : > { %1344 = vmax.xlane.f32.xlu1 %v1343_v57 }
 0x1e0   : > { %v1225_v58 = vpop.f32.mrf.mxu2 }
 0x1e1   : > { %v1226_v59 = vadd.f32 %v1225_v58, %v1162_v49 }
 0x1e2   : > { %v1247_v60 = vpop.f32.mrf.mxu3 }
 0x1e3   : > { %v1346_v61 = vsel %vm1339_vm12, %v1226_v59, -inf  ;;  %v1248_v62 = vadd.f32 %v1247_v60, %v1162_v49 }
 0x1e4   : > { %1347 = vmax.xlane.f32.xlu0 %v1346_v61 }
 0x1e5   : > { %v1349_v1 = vsel %vm1339_vm12, %v1248_v62, -inf }
 0x1e8   : > { %v1227_v63 = vpop.f32.mrf.mxu2 }
 0x1ea   : > { %v1249_v0 = vpop.f32.mrf.mxu3 }
 0x1ec   : > { %1350 = vmax.xlane.f32.xlu0 %v1349_v1 }
 0x1f0   : > { %v1269_v2 = vpop.f32.mrf.mxu2 }
 0x1f1   : > { %v1270_v3 = vadd.f32 %v1269_v2, %v1162_v49 }
 0x1f2   : > { %v1291_v4 = vpop.f32.mrf.mxu3 }
 0x1f3   : > { %v1292_v5 = vadd.f32 %v1291_v4, %v1162_v49  ;;  %v1352_v6 = vsel %vm1339_vm12, %v1270_v3, -inf }
 0x1f4   : > { %1353 = vmax.xlane.f32.xlu0 %v1352_v6 }
 0x1f5   : > { %v1355_v7 = vsel %vm1339_vm12, %v1292_v5, -inf }
 0x1f6   : > { %1356 = vmax.xlane.f32.xlu1 %v1355_v7 }
 0x1f8   : > { %v1271_v8 = vpop.f32.mrf.mxu2 }
 0x1fa   : > { %v1293_v9 = vpop.f32.mrf.mxu3 }
 0x200   : > { %v1313_v10 = vpop.f32.mrf.mxu2 }
 0x201   : > { %v1314_v11 = vadd.f32 %v1313_v10, %v1162_v49 }
 0x202   : > { %v1335_v12 = vpop.f32.mrf.mxu3 }
 0x203   : > { %v1358_v13 = vsel %vm1339_vm12, %v1314_v11, -inf  ;;  %v1336_v14 = vadd.f32 %v1335_v12, %v1162_v49 }
 0x204   : > { %1359 = vmax.xlane.f32.xlu2 %v1358_v13  ;;  %v2520_v13 = vld [vmem:[#allocation13 + $0x30] sm:$0xff] }
 0x205   : > { %v1361_v18 = vsel %vm1339_vm12, %v1336_v14, -inf }
 0x208   : > { %v1315_v15 = vpop.f32.mrf.mxu2 }
 0x20a   : > { %v1337_v16 = vpop.f32.mrf.mxu3 }
 0x20c   : > { %1362 = vmax.xlane.f32.xlu2 %v1361_v18  ;;  %v2519_v18 = vld [vmem:[#allocation13 + $0x28] sm:$0xff] }
 0x247   : > { %v1342_v20 = vpop.xlane.xlu1 %1341 }
 0x248   : > { %v1364_v21 = vsub.f32 %v1182_v51, %v1342_v20  ;;  %v2518_v20 = vld [vmem:[#allocation13 + $0x20] sm:$0xff] }
 0x24a   : > { %v1372_v22 = vmul.f32 1.442695, %v1364_v21 }
 0x24c   : > { %2680 = vpow2.f32 %v1372_v22  ;;  %v2517_v22 = vld [vmem:[#allocation13 + $0x18] sm:$0xff] }
 0x24f   : > { %v1345_v25 = vpop.xlane.xlu1 %1344 }
 0x250   : > { %v1365_v27 = vsub.f32 %v1204_v54, %v1345_v25 }
 0x252   : > { %v2681_v23 = vpop.eup %2680  ;;  %v1374_v29 = vmul.f32 1.442695, %v1365_v27 }
 0x253   : > { %v1388_v24 = vsel %vm1339_vm12, %v2681_v23, 0.0 }
 0x254   : > { %1389 = vadd.xlane.f32.xlu1 %v1388_v24 }
 0x257   : > { %v1348_v26 = vpop.xlane.xlu0 %1347 }
 0x258   : > { %v1366_v17 = vsub.f32 %v1226_v59, %v1348_v26 }
 0x25a   : > { %v1376_v28 = vmul.f32 1.442695, %v1366_v17 }
 0x25c   : > { %2682 = vpow2.f32 %v1376_v28  ;;  %v2515_v28 = vld [vmem:[#allocation13 + $0x8] sm:$0xff] }
 0x25d   : > { %2684 = vpow2.f32 %v1374_v29  ;;  %v2514_v29 = vld [vmem:[#allocation13] sm:$0xff] }
 0x25f   : > { %v1351_v30 = vpop.xlane.xlu0 %1350 }
 0x260   : > { %v1367_v32 = vsub.f32 %v1248_v62, %v1351_v30 }
 0x262   : > { %v2683_v33 = vpop.eup %2682  ;;  %v1378_v34 = vmul.f32 1.442695, %v1367_v32 }
 0x263   : > { %v1394_v31 = vsel %vm1339_vm12, %v2683_v33, 0.0  ;;  %v2685_v36 = vpop.eup %2684 }
 0x264   : > { %2686 = vpow2.f32 %v1378_v34  ;;  %1395 = vadd.xlane.f32.xlu2 %v1394_v31  ;;  %v1391_v41 = vsel %vm1339_vm12, %v2685_v36, 0.0 }
 0x267   : > { %v1354_v35 = vpop.xlane.xlu0 %1353 }
 0x268   : > { %v1368_v37 = vsub.f32 %v1270_v3, %v1354_v35 }
 0x269   : > { %v1357_v44 = vpop.xlane.xlu1 %1356 }
 0x26a   : > { %v2687_v38 = vpop.eup %2686  ;;  %v1380_v39 = vmul.f32 1.442695, %v1368_v37  ;;  %v1369_v47 = vsub.f32 %v1292_v5, %v1357_v44 }
 0x26b   : > { %v1397_v40 = vsel %vm1339_vm12, %v2687_v38, 0.0 }
 0x26c   : > { %2688 = vpow2.f32 %v1380_v39  ;;  %1398 = vadd.xlane.f32.xlu0 %v1397_v40  ;;  %1392 = vadd.xlane.f32.xlu2 %v1391_v41  ;;  %v1382_v49 = vmul.f32 1.442695, %v1369_v47  ;;  %v2528_v39 = vld [vmem:[#allocation14 + $0x30] sm:$0xff]  ;;  %v2527_v40 = vld [vmem:[#allocation14 + $0x28] sm:$0xff]  ;;  %v2526_v41 = vld [vmem:[#allocation14 + $0x20] sm:$0xff] }
 0x272   : > { %v2689_v42 = vpop.eup %2688 }
 0x273   : > { %v1400_v43 = vsel %vm1339_vm12, %v2689_v42, 0.0 }
 0x274   : > { %1401 = vadd.xlane.f32.xlu2 %v1400_v43  ;;  %v2525_v43 = vld [vmem:[#allocation14 + $0x18] sm:$0xff] }
 0x277   : > { %v1360_v45 = vpop.xlane.xlu2 %1359 }
 0x278   : > { %v1370_v46 = vsub.f32 %v1314_v11, %v1360_v45  ;;  %v2521_v11 = vld [vmem:[#allocation13 + $0x38] sm:$0xff]  ;;  %v2524_v45 = vld [vmem:[#allocation14 + $0x10] sm:$0xff] }
 0x27a   : > { %v1384_v48 = vmul.f32 1.442695, %v1370_v46 }
 0x27c   : > { %2690 = vpow2.f32 %v1384_v48 }
 0x27d   : > { %2692 = vpow2.f32 %v1382_v49 }
 0x27f   : > { %v1363_v50 = vpop.xlane.xlu2 %1362 }
 0x280   : > { %v1371_v51 = vsub.f32 %v1336_v14, %v1363_v50  ;;  %v2522_v50 = vld [vmem:[#allocation14] sm:$0xff] }
 0x282   : > { %v2691_v52 = vpop.eup %2690  ;;  %v1386_v53 = vmul.f32 1.442695, %v1371_v51 }
 0x283   : > { %v1406_v54 = vsel %vm1339_vm12, %v2691_v52, 0.0  ;;  %v3428_v55 = vpop.eup %2692 }
 0x284   : > { %2694 = vpow2.f32 %v1386_v53  ;;  %1407 = vadd.xlane.f32.xlu0 %v1406_v54  ;;  %v1403_v58 = vsel %vm1339_vm12, %v3428_v55, 0.0 }
 0x28a   : > { %v3430_v56 = vpop.eup %2694 }
 0x28b   : > { %v1409_v57 = vsel %vm1339_vm12, %v3430_v56, 0.0 }
 0x28c   : > { %1410 = vadd.xlane.f32.xlu1 %v1409_v57  ;;  %1404 = vadd.xlane.f32.xlu0 %v1403_v58 }
 0x2c7   : > { %v1390_v59 = vpop.xlane.xlu1 %1389 }
 0x2c8   : > { %2696 = vrcp.f32 %v1390_v59 }
 0x2ce   : > { %v2697_v60 = vpop.eup %2696 }
 0x2cf   : > { %v1420_v61 = vmul.f32 %v2697_v60, %v2681_v23  ;;  %v2516_v23 = vld [vmem:[#allocation13 + $0x10] sm:$0xff] }
 0x2d1   : > { %v1428_v62 = vpack.c.bf16 %v1420_v61, %v1420_v61 }
 0x2d3   : > { %2345 = vmatmul.msk.bf16.vlgmr.msra.gmra.mxu0 %vm1436_vm13, %v1428_v62 }
 0x2d7   : > { %v1396_v63 = vpop.xlane.xlu2 %1395 }
 0x2d8   : > { %2698 = vrcp.f32 %v1396_v63 }
 0x2de   : > { %v2699_v0 = vpop.eup %2698 }
 0x2df   : > { %v1422_v1 = vmul.f32 %v2699_v0, %v2683_v33  ;;  %v1399_v2 = vpop.xlane.xlu0 %1398  ;;  %v1393_v3 = vpop.xlane.xlu2 %1392 }
 0x2e0   : > { %2700 = vrcp.f32 %v1399_v2 }
 0x2e1   : > { %v1430_v4 = vpack.c.bf16 %v1422_v1, %v1422_v1  ;;  %2702 = vrcp.f32 %v1393_v3 }
 0x2e3   : > { %2347 = vmatmul.msk.bf16.vlgmr.msrb.gmra.mxu2 %vm1436_vm13, %v1430_v4 }
 0x2e6   : > { %v2701_v5 = vpop.eup %2700 }
 0x2e7   : > { %v2703_v6 = vpop.eup %2702  ;;  %v1423_v7 = vmul.f32 %v2701_v5, %v2687_v38  ;;  %v1402_v8 = vpop.xlane.xlu2 %1401  ;;  %v2529_v38 = vld [vmem:[#allocation14 + $0x38] sm:$0xff] }
 0x2e8   : > { %v1421_v9 = vmul.f32 %v2703_v6, %v2685_v36  ;;  %2704 = vrcp.f32 %v1402_v8  ;;  %1689 = vmatpush.bf16.msra.mxu0 %v2529_v38 }
 0x2e9   : > { %v1431_v10 = vpack.c.bf16 %v1423_v7, %v1423_v7 }
 0x2ea   : > { %v1429_v12 = vpack.c.bf16 %v1421_v9, %v1421_v9 }
 0x2eb   : > { %2348 = vmatmul.msk.bf16.vlgmr.msrb.gmra.mxu3 %vm1436_vm13, %v1431_v10 }
 0x2ec   : > { %2346 = vmatmul.msk.bf16.vlgmr.msra.gmra.mxu1 %vm1436_vm13, %v1429_v12  ;;  %1690 = vmatpush.bf16.msra.mxu0 %v2528_v39 }
 0x2ed   : > { %1750 = vmatpush.bf16.msra.mxu1 %v2521_v11 }
 0x2ee   : > { %v2705_v14 = vpop.eup %2704 }
 0x2ef   : > { %v1424_v15 = vmul.f32 %v2705_v14, %v2689_v42 }
 0x2f0   : > { %1691 = vmatpush.bf16.msra.mxu0 %v2527_v40 }
 0x2f1   : > { %v1432_v16 = vpack.c.bf16 %v1424_v15, %v1424_v15  ;;  %1751 = vmatpush.bf16.msra.mxu1 %v2520_v13 }
 0x2f3   : > { %2349 = vmatmul.msk.bf16.vlgmr.msrb.gmra.mxu0 %vm1436_vm13, %v1432_v16 }
 0x2f4   : > { %1692 = vmatpush.bf16.msra.mxu0 %v2526_v41 }
 0x2f5   : > { %1752 = vmatpush.bf16.msra.mxu1 %v2519_v18 }
 0x2f7   : > { %v1408_v21 = vpop.xlane.xlu0 %1407 }
 0x2f8   : > { %2706 = vrcp.f32 %v1408_v21  ;;  %1693 = vmatpush.bf16.msra.mxu0 %v2525_v43 }
 0x2f9   : > { %1753 = vmatpush.bf16.msra.mxu1 %v2518_v20 }
 0x2fc   : > { %1694 = vmatpush.bf16.msra.mxu0 %v2524_v45 }
 0x2fd   : > { %1754 = vmatpush.bf16.msra.mxu1 %v2517_v22 }
 0x2fe   : > { %v2707_v24 = vpop.eup %2706 }
 0x2ff   : > { %v1426_v25 = vmul.f32 %v2707_v24, %v2691_v52  ;;  %v1405_v26 = vpop.xlane.xlu0 %1404  ;;  %v1411_v17 = vpop.xlane.xlu1 %1410 }
 0x300   : > { %2708 = vrcp.f32 %v1405_v26 }
 0x301   : > { %v1434_v27 = vpack.c.bf16 %v1426_v25, %v1426_v25  ;;  %2710 = vrcp.f32 %v1411_v17  ;;  %1755 = vmatpush.bf16.msra.mxu1 %v2516_v23 }
 0x303   : > { %2351 = vmatmul.msk.bf16.vlgmr.msra.gmra.mxu2 %vm1436_vm13, %v1434_v27 }
 0x305   : > { %1756 = vmatpush.bf16.msra.mxu1 %v2515_v28 }
 0x306   : > { %v2709_v30 = vpop.eup %2708 }
 0x307   : > { %v2711_v32 = vpop.eup %2710  ;;  %v1425_v33 = vmul.f32 %v2709_v30, %v3428_v55  ;;  %v3088_v30 = vmov 0.0  }
 0x308   : > { %v1427_v34 = vmul.f32 %v2711_v32, %v3430_v56  ;;  %1773 = vst.msk [vmem:[#allocation4] sm:$0xff] %vm1771_vm2, %v3088_v30  ;;  %v2669_v32 = vld [vmem:[%s3570_s19] ss:$0 sm:$0xff] }
 0x309   : > { %v1433_v31 = vpack.c.bf16 %v1425_v33, %v1425_v33  ;;  %1757 = vmatpush.bf16.msra.mxu1 %v2514_v29  ;;  %v3087_v29 = vmov -inf  }
 0x30a   : > { %v1435_v35 = vpack.c.bf16 %v1427_v34, %v1427_v34  ;;  %1772 = vst.msk [vmem:[#allocation3] sm:$0xff] %vm1771_vm2, %v3087_v29 }
 0x30b   : > { %2350 = vmatmul.msk.bf16.vlgmr.msrb.gmra.mxu1 %vm1436_vm13, %v1433_v31 }
 0x30c   : > { %2352 = vmatmul.msk.bf16.vlgmr.msra.gmra.mxu3 %vm1436_vm13, %v1435_v35 }
 0x31b   : > { %1758 = vmatmul.bf16.vlgmr.msra.gmra.mxu1 %v3399_v19  ;;  %v2523_v19 = vld [vmem:[#allocation14 + $0x8] sm:$0xff] }
 0x31c   : > { %1695 = vmatpush.bf16.msra.mxu0 %v2523_v19 }
 0x320   : > { %1696 = vmatpush.bf16.msra.mxu0 %v2522_v50 }
 0x350   : > { %v1449_v36 = vpop.f32.mrf.mxu0 }
 0x351   : > { %v1581_v57 = vpack.c.bf16 %v1449_v36, %v1449_v36 }
 0x353   : > { %v1613_v63 = vunpack.c.l.b16 %v1581_v57 }
 0x358   : > { %v1451_v37 = vpop.f32.mrf.mxu0 }
 0x366   : > { %v1481_v42 = vpop.f32.mrf.mxu2 }
 0x367   : > { %v1583_v56 = vpack.c.bf16 %v1481_v42, %v1481_v42 }
 0x369   : > { %v1465_v44 = vpop.f32.mrf.mxu1  ;;  %v1615_v62 = vunpack.c.l.b16 %v1583_v56 }
 0x36a   : > { %v1582_v53 = vpack.c.bf16 %v1465_v44, %v1465_v44 }
 0x36b   : > { %v1623_v5 = vrot.slane %v1615_v62, 6 }
 0x36c   : > { %v1614_v54 = vunpack.c.l.b16 %v1582_v53 }
 0x36e   : > { %v1483_v46 = vpop.f32.mrf.mxu2  ;;  %v1497_v47 = vpop.f32.mrf.mxu3  ;;  %v1621_v59 = vrot.slane %v1614_v54, 7 }
 0x36f   : > { %v1584_v55 = vpack.c.bf16 %v1497_v47, %v1497_v47 }
 0x370   : > { %v1513_v48 = vpop.f32.mrf.mxu0  ;;  %v1622_v3 = vsel %vm1142_vm9, %v1621_v59, %v1613_v63 }
 0x371   : > { %v1467_v49 = vpop.f32.mrf.mxu1  ;;  %v1585_v58 = vpack.c.bf16 %v1513_v48, %v1513_v48  ;;  %v1616_v60 = vunpack.c.l.b16 %v1584_v55  ;;  %v1624_v8 = vsel %vm1146_vm10, %v1623_v5, %v1622_v3 }
 0x373   : > { %v1617_v1 = vunpack.c.l.b16 %v1585_v58  ;;  %v1625_v4 = vrot.slane %v1616_v60, 5 }
 0x375   : > { %v1627_v9 = vrot.slane %v1617_v1, 4  ;;  %v1626_v10 = vsel %vm1150_vm11, %v1625_v4, %v1624_v8 }
 0x376   : > { %v1499_v51 = vpop.f32.mrf.mxu3 }
 0x377   : > { %v1629_v18 = vsel %vm1628_vm14, %v1627_v9, %v1626_v10 }
 0x378   : > { %v1515_v52 = vpop.f32.mrf.mxu0 }
 0x386   : > { %v1545_v61 = vpop.f32.mrf.mxu2 }
 0x387   : > { %v1587_v6 = vpack.c.bf16 %v1545_v61, %v1545_v61 }
 0x388   : > { %v1529_v0 = vpop.f32.mrf.mxu1 }
 0x389   : > { %v1586_v2 = vpack.c.bf16 %v1529_v0, %v1529_v0  ;;  %v1619_v13 = vunpack.c.l.b16 %v1587_v6 }
 0x38b   : > { %v1618_v7 = vunpack.c.l.b16 %v1586_v2  ;;  %v1633_v22 = vrot.slane %v1619_v13, 2 }
 0x38d   : > { %v1630_v11 = vrot.slane %v1618_v7, 3 }
 0x38e   : > { %v1547_v12 = vpop.f32.mrf.mxu2 }
 0x38f   : > { %v1561_v14 = vpop.f32.mrf.mxu3  ;;  %v1632_v20 = vsel %vm1631_vm15, %v1630_v11, %v1629_v18 }
 0x390   : > { %v1588_v15 = vpack.c.bf16 %v1561_v14, %v1561_v14  ;;  %v1531_v16 = vpop.f32.mrf.mxu1  ;;  %v1635_v24 = vsel %vm1634_vm0, %v1633_v22, %v1632_v20 }
 0x392   : > { %v1620_v21 = vunpack.c.l.b16 %v1588_v15 }
 0x394   : > { %v1636_v23 = vrot.slane %v1620_v21, 1 }
 0x396   : > { %v1638_v25 = vsel %vm1637_vm1, %v1636_v23, %v1635_v24 }
 0x397   : > { %v1639_v26 = vpack.c.b16 %v1638_v25, %v1638_v25  ;;  %v1563_v17 = vpop.f32.mrf.mxu3 }
 0x398   : > { %v1759_v27 = vpop.f32.mrf.mxu1 }
 0x399   : > { %1697 = vmatmul.bf16.vlgmr.msra.gmra.mxu0 %v1639_v26 }
 0x3a0   : > { %v1761_v28 = vpop.f32.mrf.mxu1 }
 0x416   : > { %v1698_v33 = vpop.f32.mrf.mxu0 }
 0x417   : > { %v1760_v34 = vadd.f32 %v1759_v27, %v1698_v33 }
 0x419   : > { %v1767_v31 = vadd.f32 %v2669_v32, %v1760_v34 }
 0x41b   : > { %2712 = vtanh.f32 %v1767_v31 }
 0x41e   : > { %v1700_v35 = vpop.f32.mrf.mxu0 }
 0x421   : > { %v2713_v36 = vpop.eup %2712 }
 0x422   : > { %v1769_v37 = vpack.c.bf16 %v2713_v36, %v2713_v36 }
 0x424   : > { %1770 = vst [vmem:[#allocation2] sm:$0xf] %v1769_v37 }
 0x425 PF: > { %v2537_v38 = vld [vmem:[%s3347_s29 + $0x38] sm:$0xff]  ;;  %v2536_v39 = vld [vmem:[%s3347_s29 + $0x30] sm:$0xff]  ;;  %v2535_v40 = vld [vmem:[%s3347_s29 + $0x28] sm:$0xff]  ;;  %v3089_v50 = vmov 0   ;;  %vm1877_vm3 = vcmask 7168   ;;  %p2449_p4 = scmp.ne.s32.totalorder %s3202_s28, 2 }
 0x426   : > { %1843 = vmatpush.bf16.msra.mxu0 %v2537_v38  ;;  %v2534_v41 = vld [vmem:[%s3347_s29 + $0x20] sm:$0xff]  ;;  %v2533_v42 = vld [vmem:[%s3347_s29 + $0x18] sm:$0xff]  ;;  %v2532_v43 = vld [vmem:[%s3347_s29 + $0x10] sm:$0xff]  ;;  %2714 = vset.pattern.permute.xlu0 %v3089_v50 }
 0x427   : > { %v2531_v44 = vld [vmem:[%s3347_s29 + $0x8] sm:$0xff]  ;;  %v2530_v45 = vld [vmem:[%s3347_s29] sm:$0xff]  ;;  %v1861_v61 = vld [vmem:[#allocation4] sm:$0xff] }
 0x428   : > { %v2715_v47 = vld [vmem:[%s645_s27] ss:$0 sm:$0xff]  ;;  %v1857_v51 = vld [vmem:[#allocation3] sm:$0xff] }
 0x42a   : > { %1844 = vmatpush.bf16.msra.mxu0 %v2536_v39 }
 0x42b   : > { %v1774_v46 = vld [vmem:[#allocation2] sm:$0xf] }
 0x42e   : > { %1845 = vmatpush.bf16.msra.mxu0 %v2535_v40 }
 0x432   : > { %1846 = vmatpush.bf16.msra.mxu0 %v2534_v41 }
 0x436   : > { %1847 = vmatpush.bf16.msra.mxu0 %v2533_v42 }
 0x43a   : > { %1848 = vmatpush.bf16.msra.mxu0 %v2532_v43 }
 0x43e   : > { %1849 = vmatpush.bf16.msra.mxu0 %v2531_v44 }
 0x442   : > { %1850 = vmatpush.bf16.msra.mxu0 %v2530_v45 }
 0x445   : > { %1851 = vmatmul.bf16.vlgmr.msra.gmra.mxu0 %v1774_v46 }
 0x4c2   : > { %v1852_v48 = vpop.f32.mrf.mxu0 }
 0x4c3   : > { %v1853_v19 = vadd.f32 %v2715_v47, %v1852_v48 }
 0x4c5   : > { %1856 = vst [vmem:[%s3362_s2] sm:$0xff] %v1853_v19  ;;  %1858 = vmax.xlane.f32.xlu0 %v1853_v19 }
 0x4ca   : > { %v1854_v49 = vpop.f32.mrf.mxu0 }
 0x538   : > { %v1859_v52 = vpop.xlane.xlu0 %1858 }
 0x539   : > { %v1860_v53 = vmax.f32 %v1857_v51, %v1859_v52 }
 0x53b   : > { %v1862_v54 = vsub.f32 %v1857_v51, %v1860_v53  ;;  %1879 = vst.msk [vmem:[#allocation3] sm:$0xff] %vm1877_vm3, %v1860_v53  ;;  %1868 = vperm.xlu0 %2714, %v1860_v53  }
 0x53d   : > { %v1863_v59 = vmul.f32 1.442695, %v1862_v54 }
 0x5ad   : > { %v1869_v55 = vpop.permute.xlu0 %1868 }
 0x5ae   : > { %v1871_v56 = vsub.f32 %v1853_v19, %v1869_v55 }
 0x5b0   : > { %v1872_v57 = vmul.f32 1.442695, %v1871_v56 }
 0x5b2   : > { %2716 = vpow2.f32 %v1872_v57 }
 0x5b3   : > { %2718 = vpow2.f32 %v1863_v59 }
 0x5b8   : > { %v2717_v58 = vpop.eup %2716 }
 0x5b9   : > { %1874 = vadd.xlane.f32.xlu1 %v2717_v58  ;;  %v2719_v60 = vpop.eup %2718 }
 0x5ba   : > { %v1865_v62 = vmul.f32 %v2719_v60, %v1861_v61 }
 0x62b   : > { %1883 = sbr.rel (%p2449_p4) target bundleno = 1718 (0x6b6), region = 112 }
 0x62c   : > { %v1875_v63 = vpop.xlane.xlu1 %1874 }
 0x62d   : > { %v1876_v0 = vadd.f32 %v1875_v63, %v1865_v62 }
 0x62f   : > { %1878 = vst.msk [vmem:[#allocation4] sm:$0xff] %vm1877_vm3, %v1876_v0 }
 0x630   : > { %v3090_v2 = vmov 0   ;;  %v1884_v4 = vld [vmem:[#allocation3] sm:$0xff] }
 0x631   : > { %2720 = vset.pattern.permute.xlu0 %v3090_v2 }
 0x636   : > { %v1885_v1 = vld [vmem:[#allocation4] sm:$0xff] }
 0x637   : > { %2721 = vlog2.f32 %v1885_v1 }
 0x63d   : > { %v2722_v3 = vpop.eup %2721 }
 0x63e   : > { %v1887_v5 = vmul.f32 0.6931472, %v2722_v3 }
 0x640   : > { %v1888_v6 = vadd.f32 %v1887_v5, %v1884_v4 }
 0x642   : > { %1891 = vperm.xlu0 %2720, %v1888_v6  }
 0x6b4   : > { %v1892_v7 = vpop.permute.xlu0 %1891 }
 0x6b5   : > { %1894 = vst [vmem:[#allocation18] sm:$0xff] %v1892_v7 }
 0x6b6 PF: > { %s3571_s27 = sld [smem:[#allocation38_spill]]  ;;  %s3091_s9 = smov [#allocation18]  }
 0x6b7   : > { %s1920_s10 = sshll.u32 %s3091_s9, 4  ;;  %p3572_p11 = scmp.eq.s32.totalorder %s3202_s28, 2  ;;  %s1921_s10 = int_to_ptr.vmem [resolvable:$true] %s1920_s10 }
 0x6b8   : > { %s2451_s30 = sshll.u32 %s3202_s28, 3  ;;  %s1908_s0 = sshll.u32 %s3362_s2, 4  ;;  %s1909_s0 = int_to_ptr.vmem [resolvable:$true] %s1908_s0 }
 0x6b9   : > { %s3573_s18 = sld [smem:[#allocation37_spill]]  ;;  %s3092_s15 = smov [#allocation20]  }
 0x6ba   : > { %s1932_s29 = sshll.u32 %s3092_s15, 4  ;;  %s1896_s11 = scalar_lea.sflag [#allocation7], %s3344_s5  ;;  %s1933_s29 = int_to_ptr.vmem [resolvable:$true] %s1932_s29 }
 0x6bc   : > { %s1922_s4 = sshll.u32 %s3571_s27, 4  ;;  %s1923_s4 = int_to_ptr.hbm [resolvable:$true] %s1922_s4 }
 0x6bd   : > { %2566 = dma.vmem_to_hbm [thread:$0]  (%p3572_p11), %s1921_s10, 128, %s1923_s4, [#allocation19]  }
 0x6bf   : > { %s1906_s19 = scalar_lea.hbm %s3573_s18, %s2451_s30  ;;  %s2981_s2 = scalar_lea.hbm %s3573_s18, 24 }
 0x6c0   : > { %s1910_s26 = sshll.u32 %s1906_s19, 4  ;;  %s1911_s26 = int_to_ptr.hbm [resolvable:$true] %s1910_s26 }
 0x6c1   : > { %s2975_s27 = sshra.s32 %s1911_s26, 4  ;;  %s2976_s27 = int_to_ptr.hbm [resolvable:$true] %s2975_s27 }
 0x6c2   : > { %s2977_s9 = scalar_lea.hbm %s2976_s27, 8  ;;  %p2982_p9 = scmp.lt.s32.totalorder %s2976_s27, %s3573_s18 }
 0x6c3   : > { %p2978_p12 = scmp.ne.s32.totalorder %s2976_s27, %s2977_s9  ;;  %p2983_p10 = scmp.lt.s32.totalorder %s2981_s2, %s2977_s9 }
 0x6c5   : > { %p2979_p7 = pnand %p2978_p12, %p3289_p5  ;;  %p2984_p13 = por %p2983_p10, %p2982_p9 }
 0x6c7   : > { %p2980_p8 = pneg %p2979_p7 }
 0x6c9   : > { %p2985_p0 = pnand %p2984_p13, %p2980_p8 }
 0x6cb   : > { %2988 = shalt.err (!%p2985_p0)
}
 0x6cc   : > { %2564 = dma.vmem_to_hbm [thread:$0]  (%p3289_p5), %s1909_s0, 128, %s1911_s26, %s1896_s11  }
 0x6cd   : > { %s3574_s20 = sld [smem:[#allocation39_spill]]  ;;  %p3575_p2 = pmov %p3572_p11 }
 0x6cf   : > { %p3576_p1 = pmov %p3575_p2 }
 0x6d3   : > { %s1934_s19 = sshll.u32 %s3574_s20, 4  ;;  %s1935_s19 = int_to_ptr.hbm [resolvable:$true] %s1934_s19 }
 0x6d4   : > { %2568 = dma.vmem_to_hbm [thread:$0]  (%p3575_p2), %s1933_s29, 128, %s1935_s19, [#allocation19]  }
 0x6d5   : > { %3054 = dma.done.wait (%p3576_p1), [#allocation19], 256   ;;  %p3577_p3 = pmov %p3576_p1 }
 0x6d7   : > { %3056 = vsyncadd (%p3577_p3), [#allocation19], 4294967040 }
 0x6d8 PF: > { %p2618_p4 = scmp.ge.s32.totalorder %s3075_s24, 2  ;;  %s1956_s3 = sand.u32 1, %s3063_s21  }
 0x6d9   : > { %s1957_s14 = scalar_lea.sflag [#allocation7], %s1956_s3 }
 0x6da   : > { %p2598_p5 = pnand %p2618_p4, %p3293_p6 }
 0x6dc   : > { %p2599_p11 = pneg %p2598_p5 }
 0x6de   : > { %3058 = dma.done.wait (%p2599_p11), %s1957_s14, 128  }
 0x6df   : > { %3060 = vsyncadd (%p2599_p11), %s1957_s14, 4294967168  ;;  %p32_p12 = scmp.ge.s32.totalorder %s3262_s17, 5   ;;  %s3578_s21 = smov %s3067_s22 }
 0x6e0   : > { %s3579_s22 = smov %s3071_s23  ;;  %s3580_s23 = smov %s3273_s16 }
 0x6e1   : > { %s3581_s24 = smov %s3262_s17  ;;  %34 = sbr.rel (!%p32_p12) target bundleno = 21 (0x15), region = 171 }
 0x6e6   :  { %1963 = vsyncpa [#allocation6], 1 }
 0x6e7   :  { %1965 = vsyncpa [#allocation6 + $0x1], 1 }
 0x6e8   :  { %1966 = vsyncpa [#allocation9], 1 }
 0x6e9   :  { %1967 = vsyncpa [#allocation12], 1 }
 0x6ea   :  { %1968 = vsyncpa [#allocation15], 1 }
 0x6eb   :  { %1969 = vsyncpa [#allocation7], 1 }
 0x6ec   :  { %1971 = vsyncpa [#allocation7 + $0x1], 1 }
 0x6ed   :  { %1972 = vsyncpa [#allocation19], 1 }

</bundles_post_ra>
